<compile_context>
chip_gen: v5e
topology: v5e:2x2
jax: 0.10.0
libtpu: 0.0.40
codegen_flags: <defaults>
</compile_context>

<pallas_src>
import functools

import numpy as np
import jax
import jax.numpy as jnp
from jax.experimental import pallas as pl
from jax.experimental.pallas import tpu as pltpu


def _round_up(a, b):
    return (a + b - 1) // b * b


def _ptranspose_kernel(x_ref, w_ref, b_ref, out_ref, *, mask_col):
    """One (batch, row-tile) grid step.

    x_ref   : (1, TR, F)   im2col patches of [x*mask | sum_c(mask)], F = K*K*(Cin+1)
    w_ref   : (F, Cp)      flattened, spatially-flipped conv_T weight (lane-padded);
                           column `mask_col` is the all-ones mask convolution
    b_ref   : (1, Cp)      conv bias (lane-padded, 0 in the mask column)
    out_ref : (1, TR, Cp)  packed result: cols [0, Cout) = output,
                           col `mask_col` = output_mask (exact 1.0 / 0.0)
    """
    TR = x_ref.shape[1]
    Cp = w_ref.shape[-1]

    # One MXU contraction; the mask conv rides along as one weight column.
    acc = jnp.dot(x_ref[0], w_ref[...], preferred_element_type=jnp.float32)  # (TR, Cp)

    omask = acc[:, mask_col:mask_col + 1]             # conv_T(mask, ones)  (TR, 1)
    nz = omask != 0.0
    # Narrow-column reciprocal -> EUP slot; the full-tile f32 divide is gone.
    inv = pl.reciprocal(jnp.where(nz, omask, 1.0), approx=True)
    vals = acc * inv + b_ref[...]                     # output_0 == bias
    res = jnp.where(nz, vals, 0.0)

    # Explicit 0/1 indicator in the packed mask column (approx reciprocal does not
    # guarantee omask * (1/omask) == 1.0 exactly).
    ind = jnp.where(nz, 1.0, 0.0)                     # (TR, 1)
    col_ids = jax.lax.broadcasted_iota(jnp.int32, (TR, Cp), 1)
    res = jnp.where(col_ids == mask_col, ind, res)

    out_ref[0] = res.astype(out_ref.dtype)


def ptranspose2d(x, mask, weight, bias, *, stride, padding,
                 row_tile=512, compute_dtype=jnp.bfloat16, expand_mask=True):
    """x, mask: (N, Cin, H, W) float32 NCHW (PyTorch convention).
    weight: (Cin, Cout, K, K) (torch ConvTranspose2d layout), bias: (Cout,).
    Returns (output, output_mask); output is (N, Cout, OH, OW), output_mask is
    (N, Cout, OH, OW) if expand_mask else the narrow (N, 1, OH, OW) plane."""
    N, Cin, H, W = x.shape
    _, Cout, K, _ = weight.shape
    s, p = stride, padding
    # TODO(synk): padding > K-1 would need explicit output cropping; not supported here.
    assert 0 <= p <= K - 1
    OH = (H - 1) * s + K - 2 * p
    OW = (W - 1) * s + K - 2 * p

    Ce = Cin + 1                                       # extra channel = sum_c(mask)
    F = K * K * Ce                                     # im2col contraction depth
    Cp = _round_up(max(Cout + 1, 128), 128)            # lane-dense packed output width
    mask_col = Cout                                    # packed column holding output_mask

    R = OH * OW
    TR = min(_round_up(row_tile, 8), _round_up(R, 8))  # multiple-of-8 row tile
    R_pad = _round_up(R, TR)

    # ---- plain-JAX glue: NCHW -> NHWC, premultiply, channel-sum mask, dilate,
    # ---- pad, im2col.  The kernel only ever sees a matmul + epilogue.
    f32 = jnp.float32
    xm = jnp.transpose(x * mask, (0, 2, 3, 1)).astype(f32)                    # (N,H,W,Cin)
    msum = jnp.sum(jnp.transpose(mask, (0, 2, 3, 1)).astype(f32),
                   axis=-1, keepdims=True)                                    # (N,H,W,1)
    xe = jnp.concatenate([xm, msum], axis=-1)                                 # (N,H,W,Ce)

    Hd, Wd = (H - 1) * s + 1, (W - 1) * s + 1
    pad = K - 1 - p
    Hp, Wp = Hd + 2 * pad, Wd + 2 * pad
    xd = jnp.zeros((N, Hp, Wp, Ce), f32)
    xd = xd.at[:, pad:pad + Hd:s, pad:pad + Wd:s, :].set(xe)

    taps = [xd[:, kh:kh + OH, kw:kw + OW, :] for kh in range(K) for kw in range(K)]
    patches = jnp.concatenate(taps, axis=-1).reshape(N, R, F)                 # (N,R,F)
    patches = jnp.pad(patches, ((0, 0), (0, R_pad - R), (0, 0)))              # zero rows
    patches = patches.astype(compute_dtype)

    # Flip spatially, reorder to (K,K,Cin,Cout) so conv_transpose == valid conv,
    # lane-pad, add the all-ones mask-conv column, flatten to the im2col order.
    w_f = jnp.transpose(weight[:, :, ::-1, ::-1], (2, 3, 0, 1)).astype(f32)   # (K,K,Cin,Cout)
    w_k = jnp.zeros((K, K, Ce, Cp), f32)
    w_k = w_k.at[:, :, :Cin, :Cout].set(w_f)
    w_k = w_k.at[:, :, Cin, mask_col].set(1.0)
    w_k = w_k.reshape(F, Cp).astype(compute_dtype)
    b_k = jnp.zeros((1, Cp), f32).at[0, :Cout].set(bias.astype(f32))

    kernel = functools.partial(_ptranspose_kernel, mask_col=mask_col)

    # VMEM budget: double-buffered blocks (VMEM lane/sublane padding included) + headroom.
    isz = jnp.dtype(compute_dtype).itemsize
    in_blk = TR * 128 * isz
    w_blk = _round_up(F, 16) * Cp * isz
    b_blk = 8 * Cp * 4
    out_blk = TR * Cp * 4
    vmem_limit = int(min(64 << 20,
                         max(4 * (in_blk + w_blk + b_blk + out_blk) + (2 << 20),
                             16 << 20)))

    flops = 2 * N * R_pad * F * Cp
    bytes_accessed = int(patches.size * isz + w_k.size * isz + b_k.size * 4
                         + N * R_pad * Cp * 4)

    packed = pl.pallas_call(
        kernel,
        out_shape=jax.ShapeDtypeStruct((N, R_pad, Cp), jnp.float32),
        grid=(N, R_pad // TR),
        in_specs=[
            pl.BlockSpec((1, TR, F), lambda n, r: (n, r, 0)),
            pl.BlockSpec((F, Cp), lambda n, r: (0, 0)),
            pl.BlockSpec((1, Cp), lambda n, r: (0, 0)),
        ],
        out_specs=pl.BlockSpec((1, TR, Cp), lambda n, r: (n, r, 0)),
        compiler_params=pltpu.CompilerParams(
            dimension_semantics=("parallel", "parallel"),
            vmem_limit_bytes=vmem_limit),
        cost_estimate=pl.CostEstimate(flops=flops, transcendentals=N * R_pad,
                                      bytes_accessed=bytes_accessed),
    )(patches, w_k, b_k)

    # Crop / unpack the lane-dense packed result back to NCHW.
    out = jnp.transpose(packed[:, :R, :Cout].reshape(N, OH, OW, Cout), (0, 3, 1, 2))
    omask = packed[:, :R, mask_col].reshape(N, 1, OH, OW)     # exact 0/1 plane
    if expand_mask:
        omask = jnp.broadcast_to(omask, (N, Cout, OH, OW))
    return out, omask


# ----------------------- numpy reference (for validation) -----------------------
def _ref_forward(x, mask, w, b, s, p):
    N, Cin, H, W = x.shape
    _, Cout, K, _ = w.shape
    OH = (H - 1) * s + K - 2 * p
    OW = (W - 1) * s + K - 2 * p

    def convT(inp, wt, bias):
        out = np.tile(bias[None, :, None, None], (N, 1, OH, OW)).astype(np.float64)
        for n in range(N):
            for ci in range(Cin):
                for ih in range(H):
                    for iw in range(W):
                        v = inp[n, ci, ih, iw]
                        for kh in range(K):
                            oh = ih * s + kh - p
                            if oh < 0 or oh >= OH:
                                continue
                            for kw in range(K):
                                ow = iw * s + kw - p
                                if ow < 0 or ow >= OW:
                                    continue
                                out[n, :, oh, ow] += v * wt[ci, :, kh, kw]
        return out

    out = convT(x * mask, w, b)
    out0 = np.tile(b[None, :, None, None], (N, 1, OH, OW)).astype(np.float64)
    omask = convT(mask, np.ones_like(w), np.zeros(Cout))
    nz = omask != 0.0
    res = np.zeros_like(out)
    res[nz] = (out[nz] - out0[nz]) / omask[nz] + out0[nz]
    return res, np.where(nz, 1.0, 0.0)


if __name__ == "__main__":
    # Small shapes consistent with the module's forward.
    N, Cin, Cout, H, W = 2, 4, 8, 16, 16
    K, stride, padding = 3, 2, 1

    key = jax.random.PRNGKey(0)
    k1, k2, k3 = jax.random.split(key, 3)
    x = jax.random.normal(k1, (N, Cin, H, W), jnp.float32)
    # binary mask, same shape as the input (elementwise multiplied in the forward)
    mask = (jax.random.uniform(k2, (N, Cin, H, W)) > 0.4).astype(jnp.float32)

    # conv2d: kaiming-normal weight (fan_in mode on ConvTranspose2d weight), zero bias
    fan_in = Cout * K * K
    weight = (jax.random.normal(k3, (Cin, Cout, K, K), jnp.float32)
              * np.sqrt(2.0 / fan_in)).astype(jnp.float32)
    bias = jnp.zeros((Cout,), jnp.float32)
    # mask2d weight==1, bias==0 are baked in as the extra ones column of w_k.

    out, omask = ptranspose2d(x, mask, weight, bias, stride=stride, padding=padding)
    out = jax.block_until_ready(out)
    omask = jax.block_until_ready(omask)

    ref_out, ref_mask = _ref_forward(
        np.asarray(x, np.float64), np.asarray(mask, np.float64),
        np.asarray(weight, np.float64), np.asarray(bias, np.float64),
        stride, padding)
    # bf16 matmul operands (f32 accumulation) -> relaxed value tolerance; the mask
    # column is written as an exact 0/1 indicator, so it is compared tightly.
    np.testing.assert_allclose(np.asarray(out), ref_out, rtol=2e-2, atol=2e-2)
    np.testing.assert_allclose(np.asarray(omask), ref_mask, rtol=0, atol=1e-6)

    print("KERNEL_OK")
</pallas_src>

<mosaic_0001>
module attributes {stable_mosaic.version = 11 : i64} {
  func.func @_ptranspose_kernel(%arg0: i32, %arg1: i32, %arg2: memref<1x512x45xbf16, #tpu.memory_space<vmem>>, %arg3: memref<45x128xbf16, #tpu.memory_space<vmem>>, %arg4: memref<1x128xf32, #tpu.memory_space<vmem>>, %arg5: memref<1x512x128xf32, #tpu.memory_space<vmem>>) attributes {dimension_semantics = [#tpu.dimension_semantics<parallel>, #tpu.dimension_semantics<parallel>], iteration_bounds = array<i64: 2, 2>, scalar_prefetch = 0 : i64, scratch_operands = 0 : i64, tpu.core_type = #tpu.core_type<tc>, window_params = [{transform_indices = @transform_0, window_bounds = array<i64: 1, 512, 45>}, {pipeline_mode = #tpu.pipeline_mode<synchronous>, transform_indices = @transform_1, window_bounds = array<i64: 45, 128>}, {pipeline_mode = #tpu.pipeline_mode<synchronous>, transform_indices = @transform_2, window_bounds = array<i64: 1, 128>}, {transform_indices = @transform_3, window_bounds = array<i64: 1, 512, 128>}]} {
    %c0 = arith.constant 0 : index
    %c0_0 = arith.constant 0 : index
    %c0_1 = arith.constant 0 : index
    %0 = vector.load %arg2[%c0, %c0_0, %c0_1] : memref<1x512x45xbf16, #tpu.memory_space<vmem>>, vector<1x512x45xbf16>
    %1 = vector.shape_cast %0 : vector<1x512x45xbf16> to vector<512x45xbf16>
    %c0_2 = arith.constant 0 : index
    %c0_3 = arith.constant 0 : index
    %2 = vector.load %arg3[%c0_2, %c0_3] : memref<45x128xbf16, #tpu.memory_space<vmem>>, vector<45x128xbf16>
    %cst = arith.constant dense<0.000000e+00> : vector<512x128xf32>
    %3 = tpu.matmul %1, %2, %cst {dimension_numbers = #tpu.dot_dimension_numbers<[1], [0], [0], [1], [0, 0, 1, 1], [], []>} : vector<512x45xbf16>, vector<45x128xbf16>, vector<512x128xf32> -> vector<512x128xf32>
    %4 = vector.extract_strided_slice %3 {offsets = [0, 8], sizes = [512, 1], strides = [1, 1]} : vector<512x128xf32> to vector<512x1xf32>
    %cst_4 = arith.constant 0.000000e+00 : f32
    %5 = vector.broadcast %cst_4 : f32 to vector<512x1xf32>
    %6 = arith.cmpf one, %4, %5 : vector<512x1xf32>
    %cst_5 = arith.constant 1.000000e+00 : f32
    %7 = vector.broadcast %cst_5 : f32 to vector<512x1xf32>
    %8 = arith.select %6, %4, %7 : vector<512x1xi1>, vector<512x1xf32>
    %9 = tpu.reciprocal %8 {approx = true} : vector<512x1xf32> -> vector<512x1xf32>
    %10 = vector.broadcast %9 : vector<512x1xf32> to vector<512x128xf32>
    %11 = arith.mulf %3, %10 : vector<512x128xf32>
    %c0_6 = arith.constant 0 : index
    %c0_7 = arith.constant 0 : index
    %12 = vector.load %arg4[%c0_6, %c0_7] : memref<1x128xf32, #tpu.memory_space<vmem>>, vector<1x128xf32>
    %13 = vector.broadcast %12 : vector<1x128xf32> to vector<512x128xf32>
    %14 = arith.addf %11, %13 : vector<512x128xf32>
    %cst_8 = arith.constant 0.000000e+00 : f32
    %15 = vector.shape_cast %6 : vector<512x1xi1> to vector<512x1xi1>
    %16 = vector.broadcast %15 : vector<512x1xi1> to vector<512x128xi1>
    %17 = vector.broadcast %cst_8 : f32 to vector<512x128xf32>
    %18 = arith.select %16, %14, %17 : vector<512x128xi1>, vector<512x128xf32>
    %cst_9 = arith.constant 1.000000e+00 : f32
    %cst_10 = arith.constant 0.000000e+00 : f32
    %19 = vector.broadcast %cst_9 : f32 to vector<512x1xf32>
    %20 = vector.broadcast %cst_10 : f32 to vector<512x1xf32>
    %21 = arith.select %6, %19, %20 : vector<512x1xi1>, vector<512x1xf32>
    %22 = tpu.iota {dimensions = array<i32: 1>} : vector<512x128xi32>
    %c8_i32 = arith.constant 8 : i32
    %23 = vector.broadcast %c8_i32 : i32 to vector<512x128xi32>
    %24 = arith.cmpi eq, %22, %23 : vector<512x128xi32>
    %25 = vector.shape_cast %21 : vector<512x1xf32> to vector<512x1xf32>
    %26 = vector.broadcast %25 : vector<512x1xf32> to vector<512x128xf32>
    %27 = arith.select %24, %26, %18 : vector<512x128xi1>, vector<512x128xf32>
    %c0_11 = arith.constant 0 : index
    %c0_12 = arith.constant 0 : index
    %c0_13 = arith.constant 0 : index
    %28 = vector.load %arg5[%c0_11, %c0_12, %c0_13] : memref<1x512x128xf32, #tpu.memory_space<vmem>>, vector<1x512x128xf32>
    %29 = vector.shape_cast %28 : vector<1x512x128xf32> to vector<512x128xf32>
    %30 = vector.shape_cast %27 : vector<512x128xf32> to vector<1x512x128xf32>
    tpu.vector_store %arg5[%c0_11, %c0_12, %c0_13], %30 {strides = array<i32>} : memref<1x512x128xf32, #tpu.memory_space<vmem>>, vector<1x512x128xf32>,
    return
  }
  func.func @transform_0(%arg0: i32, %arg1: i32) -> (i32, i32, i32) {
    %c0_i32 = arith.constant 0 : i32
    %c0_i32_0 = arith.constant 0 : i32
    return %arg0, %arg1, %c0_i32 : i32, i32, i32
  }
  func.func @transform_1(%arg0: i32, %arg1: i32) -> (i32, i32) {
    %c0_i32 = arith.constant 0 : i32
    %c0_i32_0 = arith.constant 0 : i32
    %c0_i32_1 = arith.constant 0 : i32
    return %c0_i32, %c0_i32_0 : i32, i32
  }
  func.func @transform_2(%arg0: i32, %arg1: i32) -> (i32, i32) {
    %c0_i32 = arith.constant 0 : i32
    %c0_i32_0 = arith.constant 0 : i32
    %c0_i32_1 = arith.constant 0 : i32
    return %c0_i32, %c0_i32_0 : i32, i32
  }
  func.func @transform_3(%arg0: i32, %arg1: i32) -> (i32, i32, i32) {
    %c0_i32 = arith.constant 0 : i32
    %c0_i32_0 = arith.constant 0 : i32
    return %arg0, %arg1, %c0_i32 : i32, i32, i32
  }
}

</mosaic_0001>

<bundles_post_ra>
// kernel: tpu_custom_call.1
= control target key start
LH: loop header
LB: loop body
LE: loop exit
PB: predicated region body
PF: predicated region fallthrough
CT: control target
= control target key end

     0   :  { %8 = vsyncpa [#allocation3], 0  ;;  %s5017_s0 = inlined_call_operand.vmem [shape: bf16[2,1024,45], index: 0, kind: input, shape index: {}]   ;;  %s5018_s1 = inlined_call_operand.vmem [shape: bf16[45,128], index: 1, kind: input, shape index: {}]   ;;  %s5019_s2 = inlined_call_operand.vmem [shape: f32[1,128], index: 2, kind: input, shape index: {}]   ;;  %s5020_s3 = inlined_call_operand.hbm [shape: f32[2,1024,128], index: 3, kind: output, shape index: {}]  }
   0x1   :  { %10 = vsyncpa [#allocation3 + $0x1], 0  ;;  %s3087_s12 = smov 0   ;;  %s3089_s13 = smov 0  }
   0x2   :  { %s3091_s14 = smov 0   ;;  %s3093_s15 = smov 0  }
   0x3   :  { %s3095_s16 = smov 0   ;;  %s3097_s17 = smov 0  }
   0x4   :  { %s3099_s18 = smov 0   ;;  %s3101_s19 = smov 0  }
   0x5 LB: > { %s2364_s20 = sadd.s32 4294967295, %s3059_s19   ;;  %s2365_s21 = sadd.s32 4294967294, %s3059_s19   ;;  %s3059_s19 = sphi %s3101_s19, %s16_s19   ;;  %s3055_s18 = sphi %s3099_s18, %s5425_s18   ;;  %s3051_s17 = sphi %s3097_s17, %s5424_s17   ;;  %s3047_s16 = sphi %s3095_s16, %s5423_s16   ;;  %s3043_s15 = sphi %s3093_s15, %s5422_s15   ;;  %s3039_s14 = sphi %s3091_s14, %s5421_s14   ;;  %s3035_s13 = sphi %s3089_s13, %s5420_s13   ;;  %s3031_s12 = sphi %s3087_s12, %s5419_s12  }
   0x6   : > { %s25_s22 = sadd.s32 1, %s3051_s17  ;;  %s28_s23 = sadd.s32 1, %s3055_s18 }
   0x7   : > { %p26_p0 = scmp.ge.s32.totalorder %s25_s22, 2  ;;  %p117_p1 = scmp.ne.s32.totalorder %s3039_s14, %s3035_s13 }
   0x8   : > { %p118_p2 = scmp.eq.s32.totalorder %s2364_s20, 3  ;;  %p123_p5 = scmp.ne.s32.totalorder %s3035_s13, %s3031_s12 }
   0x9   : > { %s5427_s22 = smov (%p26_p0, %s25_s22), 0  ;;  %s5429_s23 = smov (!%p26_p0, %s28_s23), %s3055_s18 }
   0xa   : > { %s103_s24 = ssub.s32 %s3051_s17, %s5427_s22  ;;  %p3138_p3 = por %p118_p2, %p117_p1 }
   0xb   : > { %p30_p4 = scmp.ge.s32.totalorder %s5429_s23, 2  ;;  %p124_p6 = scmp.eq.s32.totalorder %s2365_s21, 3 }
   0xc   : > { %p2368_p7 = scmp.ge.s32.totalorder %s3059_s19, 1  ;;  %p161_p9 = scmp.lt.s32.totalorder %s3059_s19, 5 }
   0xd   : > { %s5431_s23 = smov (%p30_p4, %s5429_s23), 0  ;;  %p3147_p8 = por %p124_p6, %p123_p5 }
   0xe   : > { %s102_s27 = ssub.s32 %s3055_s18, %s5431_s23  ;;  %s107_s28 = sadd.s32 1, %s3039_s14 }
   0xf   : > { %s104_s29 = sor.u32 %s103_s24, %s102_s27  ;;  %p162_p10 = pnand %p2368_p7, %p161_p9 }
  0x10   : > { %p105_p11 = scmp.eq.s32.totalorder %s104_s29, 0 }
  0x11   : > { %165 = sbr.rel (%p162_p10) target bundleno = 721 (0x2d1), region = 32 }
  0x12   : > { %s3156_s30 = scalar_select %p105_p11, %s3039_s14, %s107_s28  }
  0x16   : > { %v2511_v0 = vld [vmem:[%s5018_s1 + $0x10] sm:$0xf]  ;;  %v2585_v1 = vld [vmem:[%s5018_s1 + $0x10] sm:$0x70]  ;;  %vm545_vm0 = vcmask 1045504   ;;  %vm546_vm1 = vcmask 1046528  }
  0x17   : > { %v2512_v2 = vor.u32 %v2585_v1, %v2511_v0  ;;  %s3165_s8 = sshll.u32 %s3043_s15, 6  ;;  %p190_p12 = scmp.lt.s32.totalorder %s3047_s16, 1  ;;  %v3061_v3 = vmov 65535   ;;  %v2584_v7 = vld [vmem:[%s5018_s1 + $0x8] sm:$0xff]  ;;  %v2583_v8 = vld [vmem:[%s5018_s1] sm:$0xff]  ;;  %vm448_vm2 = vcmask 367616  }
  0x18   : > { %v547_v4 = vsel %vm545_vm0, 4294967295, %v3061_v3  ;;  %p192_p13 = scmp.lt.s32.totalorder %s3165_s8, 127  ;;  %v3062_v25 = vmov 8   ;;  %v5022_v32 = vmov 0   ;;  %v5025_v46 = vmov 0.0  }
  0x19   : > { %v548_v5 = vsel %vm546_vm1, %v547_v4, 0  ;;  %s191_s9 = scalar_select %p190_p12, %s3047_s16, 1  ;;  %2673 = vset.pattern.permute.xlu2 %v3062_v25  ;;  %2672 = vset.pattern.permute.xlu1 %v3062_v25 }
  0x1a   : > { %v550_v6 = vand.u32 %v2512_v2, %v548_v5  ;;  %s193_s10 = scalar_select %p192_p13, %s3165_s8, 127  ;;  %2674 = vset.pattern.permute.xlu0 %v3062_v25 }
  0x1b   : > { %s2371_s11 = sshll.u32 %s191_s9, 7 }
  0x1c   : > { %557 = vmatpush.bf16.msra.mxu0 %v550_v6  ;;  %2586 = vmatpush.bf16.msra.mxu1 %v550_v6  ;;  %s195_s24 = sadd.s32 %s2371_s11, %s193_s10  ;;  %s186_s11 = sand.u32 1, %s3035_s13  }
  0x1d   : > { %2587 = vmatpush.bf16.msra.mxu2 %v550_v6  ;;  %2588 = vmatpush.bf16.msra.mxu3 %v550_v6  ;;  %s2372_s15 = sshll.u32 %s195_s24, 2  ;;  %s2369_s20 = sshll.u32 %s186_s11, 9 }
  0x1e   : > { %s3180_s5 = scalar_lea.vmem %s5017_s0, %s2372_s15  ;;  %s4665_s21 = scalar_lea.vmem [#allocation2], %s2369_s20 }
  0x1f   : > { %v2551_v9 = vld [vmem:[%s3180_s5] sm:$0xff]  ;;  %v2560_v13 = vld [vmem:[%s3180_s5 + $0x48] sm:$0xff]  ;;  %v2553_v17 = vld [vmem:[%s3180_s5 + $0x10] sm:$0xff]  ;;  %s2547_s24 = sshll.u32 %s3047_s16, 7  ;;  %s2279_s4 = sshll.u32 %s4665_s21, 4  ;;  %s2280_s4 = int_to_ptr.vmem [resolvable:$true] %s2279_s4 }
  0x20   : > { %558 = vmatpush.bf16.msra.mxu0 %v2584_v7  ;;  %2589 = vmatpush.bf16.msra.mxu1 %v2584_v7  ;;  %v2559_v10 = vld [vmem:[%s3180_s5 + $0x40] sm:$0xff]  ;;  %v2552_v14 = vld [vmem:[%s3180_s5 + $0x8] sm:$0xff]  ;;  %v2561_v18 = vld [vmem:[%s3180_s5 + $0x50] sm:$0xff]  ;;  %s2276_s16 = sadd.s32 %s2547_s24, %s3165_s8  ;;  %s2985_s20 = scalar_lea.hbm %s5020_s3, 2048 }
  0x21   : > { %2590 = vmatpush.bf16.msra.mxu2 %v2584_v7  ;;  %2591 = vmatpush.bf16.msra.mxu3 %v2584_v7  ;;  %v2567_v11 = vld [vmem:[%s3180_s5 + $0x80] sm:$0xff]  ;;  %v2568_v15 = vld [vmem:[%s3180_s5 + $0x88] sm:$0xff]  ;;  %v2569_v19 = vld [vmem:[%s3180_s5 + $0x90] sm:$0xff]  ;;  %s2548_s15 = sshll.u32 %s2276_s16, 3 }
  0x22   : > { %v2575_v12 = vld [vmem:[%s3180_s5 + $0xc0] sm:$0xff]  ;;  %v2576_v16 = vld [vmem:[%s3180_s5 + $0xc8] sm:$0xff]  ;;  %v2577_v20 = vld [vmem:[%s3180_s5 + $0xd0] sm:$0xff]  ;;  %s2278_s29 = scalar_lea.hbm %s5020_s3, %s2548_s15 }
  0x23   : > { %v2554_v21 = vld [vmem:[%s3180_s5 + $0x18] sm:$0xff]  ;;  %v2563_v26 = vld [vmem:[%s3180_s5 + $0x60] sm:$0xff]  ;;  %v2556_v45 = vld [vmem:[%s3180_s5 + $0x28] sm:$0xff]  ;;  %s2281_s8 = sshll.u32 %s2278_s29, 4  ;;  %s2282_s8 = int_to_ptr.hbm [resolvable:$true] %s2281_s8 }
  0x24   : > { %559 = vmatpush.bf16.msra.mxu0 %v2583_v8  ;;  %2592 = vmatpush.bf16.msra.mxu1 %v2583_v8  ;;  %v2562_v22 = vld [vmem:[%s3180_s5 + $0x58] sm:$0xff]  ;;  %v2555_v27 = vld [vmem:[%s3180_s5 + $0x20] sm:$0xff]  ;;  %v2564_v49 = vld [vmem:[%s3180_s5 + $0x68] sm:$0xff]  ;;  %s2979_s6 = sshra.s32 %s2282_s8, 4  ;;  %s2980_s6 = int_to_ptr.hbm [resolvable:$true] %s2979_s6 }
  0x25   : > { %2593 = vmatpush.bf16.msra.mxu2 %v2583_v8  ;;  %2594 = vmatpush.bf16.msra.mxu3 %v2583_v8  ;;  %v2570_v23 = vld [vmem:[%s3180_s5 + $0x98] sm:$0xff]  ;;  %v2571_v28 = vld [vmem:[%s3180_s5 + $0xa0] sm:$0xff]  ;;  %v2580_v1 = vld [vmem:[%s3180_s5 + $0xe8] sm:$0xff]  ;;  %s2981_s7 = scalar_lea.hbm %s2980_s6, 512  ;;  %p2986_p4 = scmp.lt.s32.totalorder %s2980_s6, %s5020_s3 }
  0x26   : > { %v2578_v24 = vld [vmem:[%s3180_s5 + $0xd8] sm:$0xff]  ;;  %v2579_v29 = vld [vmem:[%s3180_s5 + $0xe0] sm:$0xff]  ;;  %p2982_p0 = scmp.ne.s32.totalorder %s2980_s6, %s2981_s7  ;;  %p2987_p5 = scmp.lt.s32.totalorder %s2985_s20, %s2981_s7 }
  0x27   : > { %2513 = vmatmul.msk.bf16.vlgmr.msra.gmra.mxu0 %vm448_vm2, %v2551_v9  ;;  %2521 = vmatmul.msk.bf16.vlgmr.msra.gmra.mxu1 %vm448_vm2, %v2559_v10  ;;  %v2566_v5 = vld [vmem:[%s3180_s5 + $0x78] sm:$0xff] }
  0x28   : > { %2529 = vmatmul.msk.bf16.vlgmr.msra.gmra.mxu2 %vm448_vm2, %v2567_v11  ;;  %2537 = vmatmul.msk.bf16.vlgmr.msra.gmra.mxu3 %vm448_vm2, %v2575_v12  ;;  %v2574_v53 = vld [vmem:[%s3180_s5 + $0xb8] sm:$0xff]  ;;  %p2983_p1 = pnand %p2982_p0, %p3138_p3  ;;  %p2988_p6 = por %p2987_p5, %p2986_p4 }
  0x2a   : > { %p2984_p2 = pneg %p2983_p1 }
  0x2c   : > { %p2989_p7 = pnand %p2988_p6, %p2984_p2 }
  0x37   : > { %2522 = vmatmul.msk.bf16.gmra.mxu1 %vm448_vm2, %v2560_v13  ;;  %2514 = vmatmul.msk.bf16.gmra.mxu0 %vm448_vm2, %v2552_v14  ;;  %v2572_v13 = vld [vmem:[%s3180_s5 + $0xa8] sm:$0xff] }
  0x38   : > { %2530 = vmatmul.msk.bf16.gmra.mxu2 %vm448_vm2, %v2568_v15  ;;  %2538 = vmatmul.msk.bf16.gmra.mxu3 %vm448_vm2, %v2576_v16 }
  0x47   : > { %2515 = vmatmul.msk.bf16.gmra.mxu0 %vm448_vm2, %v2553_v17  ;;  %2523 = vmatmul.msk.bf16.gmra.mxu1 %vm448_vm2, %v2561_v18 }
  0x48   : > { %2531 = vmatmul.msk.bf16.gmra.mxu2 %vm448_vm2, %v2569_v19  ;;  %2539 = vmatmul.msk.bf16.gmra.mxu3 %vm448_vm2, %v2577_v20  ;;  %v2582_v20 = vld [vmem:[%s3180_s5 + $0xf8] sm:$0xff] }
  0x57   : > { %2516 = vmatmul.msk.bf16.gmra.mxu0 %vm448_vm2, %v2554_v21  ;;  %2524 = vmatmul.msk.bf16.gmra.mxu1 %vm448_vm2, %v2562_v22 }
  0x58   : > { %2532 = vmatmul.msk.bf16.gmra.mxu2 %vm448_vm2, %v2570_v23  ;;  %2540 = vmatmul.msk.bf16.gmra.mxu3 %vm448_vm2, %v2578_v24 }
  0x67   : > { %2525 = vmatmul.msk.bf16.gmra.mxu1 %vm448_vm2, %v2563_v26  ;;  %2517 = vmatmul.msk.bf16.gmra.mxu0 %vm448_vm2, %v2555_v27 }
  0x68   : > { %2533 = vmatmul.msk.bf16.gmra.mxu2 %vm448_vm2, %v2571_v28  ;;  %2541 = vmatmul.msk.bf16.gmra.mxu3 %vm448_vm2, %v2579_v29 }
  0x77   : > { %2518 = vmatmul.msk.bf16.gmra.mxu0 %vm448_vm2, %v2556_v45  ;;  %2526 = vmatmul.msk.bf16.gmra.mxu1 %vm448_vm2, %v2564_v49  ;;  %v2557_v49 = vld [vmem:[%s3180_s5 + $0x30] sm:$0xff] }
  0x78   : > { %2542 = vmatmul.msk.bf16.gmra.mxu3 %vm448_vm2, %v2580_v1  ;;  %2534 = vmatmul.msk.bf16.gmra.mxu2 %vm448_vm2, %v2572_v13  ;;  %v2573_v13 = vld [vmem:[%s3180_s5 + $0xb0] sm:$0xff] }
  0x87   : > { %2519 = vmatmul.msk.bf16.gmra.mxu0 %vm448_vm2, %v2557_v49  ;;  %v2581_v49 = vld [vmem:[%s3180_s5 + $0xf0] sm:$0xff] }
  0x88   : > { %2535 = vmatmul.msk.bf16.gmra.mxu2 %vm448_vm2, %v2573_v13  ;;  %2543 = vmatmul.msk.bf16.gmra.mxu3 %vm448_vm2, %v2581_v49 }
  0x98   : > { %2536 = vmatmul.msk.bf16.gmra.mxu2 %vm448_vm2, %v2574_v53  ;;  %2544 = vmatmul.msk.bf16.gmra.mxu3 %vm448_vm2, %v2582_v20 }
  0xa4   : > { %v3222_v30 = vpop.f32.mrf.mxu0  ;;  %v3224_v31 = vpop.f32.mrf.mxu1 }
  0xa5   : > { %5121 = vst [vmem:[#allocation5_spill] sm:$0xff] %v3222_v30  ;;  %vm737_vm3 = vcmp.ne.f32.partialorder %v3224_v31, 0.0  ;;  %vm721_vm4 = vcmp.ne.f32.partialorder %v3222_v30, 0.0 }
  0xa6   : > { %5122 = vst [vmem:[#allocation6_spill] sm:$0xff] %v3224_v31  ;;  %v1381_v33 = vsel %vm737_vm3, 1, %v5022_v32  ;;  %v801_v34 = vsel %vm737_vm3, %v3224_v31, 1.0  ;;  %v1365_v35 = vsel %vm721_vm4, 1, %v5022_v32  ;;  %v785_v36 = vsel %vm721_vm4, %v3222_v30, 1.0 }
  0xa7   : > { %1478 = vperm.xlu2 %2673, %v1381_v33   ;;  %2836 = vrcp.f32 %v801_v34  ;;  %1430 = vperm.xlu1 %2672, %v1365_v35   ;;  %v3264_v47 = vsel %vm721_vm4, 1.0, %v5025_v46  ;;  %v3269_v48 = vsel %vm737_vm3, 1.0, %v5025_v46  ;;  %v2558_v35 = vld [vmem:[%s3180_s5 + $0x38] sm:$0xff] }
  0xa8   : > { %2838 = vrcp.f32 %v785_v36  ;;  %5127 = vst [vmem:[#allocation11_spill] sm:$0xff] %v3264_v47  ;;  %2520 = vmatmul.msk.bf16.gmra.mxu0 %vm448_vm2, %v2558_v35 }
  0xa9   : > { %5128 = vst [vmem:[#allocation12_spill] sm:$0xff] %v3269_v48 }
  0xab   : > { %v3240_v37 = vpop.f32.mrf.mxu2  ;;  %v3242_v38 = vpop.f32.mrf.mxu3 }
  0xac   : > { %5123 = vst [vmem:[#allocation7_spill] sm:$0xff] %v3240_v37  ;;  %v3244_v39 = vpop.f32.mrf.mxu0  ;;  %vm753_vm5 = vcmp.ne.f32.partialorder %v3240_v37, 0.0  ;;  %v3247_v40 = vpop.f32.mrf.mxu1  ;;  %vm5098_vm8 = vcmp.ne.f32.partialorder %v3242_v38, 0.0 }
  0xad   : > { %5124 = vst [vmem:[#allocation8_spill] sm:$0xff] %v3242_v38  ;;  %v2837_v41 = vpop.eup %2836  ;;  %vm722_vm6 = vcmp.ne.f32.partialorder %v3244_v39, 0.0  ;;  %v1397_v42 = vsel %vm753_vm5, 1, %v5022_v32  ;;  %v817_v43 = vsel %vm753_vm5, %v3240_v37, 1.0  ;;  %vm738_vm7 = vcmp.ne.f32.partialorder %v3247_v40, 0.0 }
  0xae   : > { %5125 = vst [vmem:[#allocation9_spill] sm:$0xff] %v3244_v39  ;;  %1526 = vperm.xlu0 %2674, %v1397_v42   ;;  %v1366_v44 = vsel %vm722_vm6, 1, %v5022_v32  ;;  %2840 = vrcp.f32 %v817_v43  ;;  %v3277_v50 = vsel %vm722_vm6, 1.0, %v5025_v46  ;;  %v3282_v51 = vsel %vm738_vm7, 1.0, %v5025_v46  ;;  %v2839_v54 = vpop.eup %2838 }
  0xaf   : > { %5126 = vst [vmem:[#allocation10_spill] sm:$0xff] %v3247_v40  ;;  %995 = vperm.xlu1 %2672, %v2837_v41   ;;  %1433 = vperm.xlu2 %2673, %v1366_v44   ;;  %v3294_v56 = vsel %vm5098_vm8, 1.0, %v5025_v46  ;;  %v802_v60 = vsel %vm738_vm7, %v3247_v40, 1.0  ;;  %v3323_v2 = vsel %vm753_vm5, 1.0, %v5025_v46  ;;  %v833_v4 = vsel %vm5098_vm8, %v3242_v38, 1.0 }
  0xb0   : > { %5129 = vst [vmem:[#allocation13_spill] sm:$0xff] %v3277_v50  ;;  %2842 = vrcp.f32 %v802_v60  ;;  %v1382_v7 = vsel %vm738_vm7, 1, %v5022_v32  ;;  %v786_v24 = vsel %vm722_vm6, %v3244_v39, 1.0  ;;  %v5158_v40 = vmov 0  }
  0xb1   : > { %5130 = vst [vmem:[#allocation14_spill] sm:$0xff] %v3282_v51  ;;  %2844 = vrcp.f32 %v833_v4 }
  0xb2   : > { %5132 = vst [vmem:[#allocation16_spill] sm:$0xff] %v3294_v56 }
  0xb3   : > { %v3289_v55 = vpop.f32.mrf.mxu2  ;;  %v3296_v57 = vpop.f32.mrf.mxu3  ;;  %5135 = vst [vmem:[#allocation19_spill] sm:$0xff] %v3323_v2 }
  0xb4   : > { %5131 = vst [vmem:[#allocation15_spill] sm:$0xff] %v3289_v55  ;;  %vm754_vm9 = vcmp.ne.f32.partialorder %v3289_v55, 0.0  ;;  %vm5105_vm10 = vcmp.ne.f32.partialorder %v3296_v57, 0.0  ;;  %v3300_v58 = vpop.f32.mrf.mxu1  ;;  %v3302_v59 = vpop.f32.mrf.mxu0 }
  0xb5   : > { %5133 = vst [vmem:[#allocation17_spill] sm:$0xff] %v3300_v58  ;;  %v3310_v61 = vsel %vm5105_vm10, 1.0, %v5025_v46  ;;  %v2841_v62 = vpop.eup %2840  ;;  %v1398_v63 = vsel %vm754_vm9, 1, %v5022_v32  ;;  %vm739_vm11 = vcmp.ne.f32.partialorder %v3300_v58, 0.0  ;;  %v3328_v3 = vsel %vm754_vm9, 1.0, %v5025_v46 }
  0xb6   : > { %5134 = vst [vmem:[#allocation18_spill] sm:$0xff] %v3310_v61  ;;  %915 = vperm.xlu0 %2674, %v2839_v54   ;;  %v1383_v8 = vsel %vm739_vm11, 1, %v5022_v32  ;;  %v834_v11 = vsel %vm5105_vm10, %v3296_v57, 1.0  ;;  %vm723_vm12 = vcmp.ne.f32.partialorder %v3302_v59, 0.0  ;;  %v2843_v12 = vpop.eup %2842  ;;  %v3361_v15 = vsel %vm739_vm11, 1.0, %v5025_v46  ;;  %v2565_v54 = vld [vmem:[%s3180_s5 + $0x70] sm:$0xff] }
  0xb7   : > { %1529 = vperm.xlu1 %2672, %v1398_v63   ;;  %1075 = vperm.xlu2 %2673, %v2841_v62   ;;  %5136 = vst [vmem:[#allocation20_spill] sm:$0xff] %v3328_v3  ;;  %v3356_v14 = vsel %vm723_vm12, 1.0, %v5025_v46  ;;  %2846 = vrcp.f32 %v834_v11  ;;  %v2845_v21 = vpop.eup %2844  ;;  %v787_v22 = vsel %vm723_vm12, %v3302_v59, 1.0  ;;  %v1367_v1 = vsel %vm723_vm12, 1, %v5022_v32  ;;  %s2265_s5 = scalar_lea.sflag [#allocation3], %s186_s11 }
  0xb8   : > { %5137 = vst [vmem:[#allocation21_spill] sm:$0xff] %v3356_v14  ;;  %2848 = vrcp.f32 %v787_v22  ;;  %2527 = vmatmul.msk.bf16.gmra.mxu1 %vm448_vm2, %v2565_v54 }
  0xb9   : > { %5138 = vst [vmem:[#allocation22_spill] sm:$0xff] %v3361_v15  ;;  %2850 = vrcp.f32 %v786_v24 }
  0xbb   : > { %v3335_v6 = vpop.f32.mrf.mxu2  ;;  %v3363_v16 = vpop.f32.mrf.mxu3 }
  0xbc   : > { %v3343_v9 = vpop.f32.mrf.mxu1  ;;  %v3345_v10 = vpop.f32.mrf.mxu0  ;;  %vm755_vm15 = vcmp.ne.f32.partialorder %v3335_v6, 0.0  ;;  %vm5072_vm0 = vcmp.ne.f32.partialorder %v3363_v16, 0.0 }
  0xbd   : > { %vm740_vm13 = vcmp.ne.f32.partialorder %v3343_v9, 0.0  ;;  %vm724_vm14 = vcmp.ne.f32.partialorder %v3345_v10, 0.0  ;;  %v1399_v25 = vsel %vm755_vm15, 1, %v5022_v32  ;;  %v2847_v26 = vpop.eup %2846  ;;  %v3398_v27 = vsel %vm755_vm15, 1.0, %v5025_v46 }
  0xbe   : > { %1481 = vperm.xlu0 %2674, %v1382_v7   ;;  %v3369_v17 = vsel %vm740_vm13, 1.0, %v5025_v46  ;;  %v3375_v18 = vsel %vm724_vm14, 1.0, %v5025_v46  ;;  %5141 = vst [vmem:[#allocation25_spill] sm:$0xff] %v3398_v27  ;;  %v3403_v28 = vsel %vm5072_vm0, 1.0, %v5025_v46  ;;  %v835_v42 = vsel %vm5072_vm0, %v3363_v16, 1.0  ;;  %v2849_v43 = vpop.eup %2848 }
  0xbf   : > { %1484 = vperm.xlu1 %2672, %v1383_v8   ;;  %1000 = vperm.xlu2 %2673, %v2843_v12   ;;  %5139 = vst [vmem:[#allocation23_spill] sm:$0xff] %v3369_v17  ;;  %v2851_v44 = vpop.eup %2850  ;;  %2852 = vrcp.f32 %v835_v42  ;;  %v1384_v45 = vsel %vm740_vm13, 1, %v5022_v32  ;;  %v819_v63 = vsel %vm755_vm15, %v3335_v6, 1.0  ;;  %v818_v7 = vsel %vm754_vm9, %v3289_v55, 1.0 }
  0xc0   : > { %5140 = vst [vmem:[#allocation24_spill] sm:$0xff] %v3375_v18  ;;  %2854 = vrcp.f32 %v819_v63  ;;  %v1368_v8 = vsel %vm724_vm14, 1, %v5022_v32  ;;  %v803_v42 = vsel %vm739_vm11, %v3300_v58, 1.0 }
  0xc1   : > { %5142 = vst [vmem:[#allocation26_spill] sm:$0xff] %v3403_v28  ;;  %2856 = vrcp.f32 %v818_v7 }
  0xc3   : > { %v3385_v23 = vpop.f32.mrf.mxu2  ;;  %v3407_v33 = vpop.f32.mrf.mxu3 }
  0xc4   : > { %vm756_vm1 = vcmp.ne.f32.partialorder %v3385_v23, 0.0  ;;  %v3405_v29 = vpop.f32.mrf.mxu1  ;;  %vm5075_vm3 = vcmp.ne.f32.partialorder %v3407_v33, 0.0  ;;  %v3432_v60 = vpop.f32.mrf.mxu0 }
  0xc5   : > { %v3412_v34 = vsel %vm756_vm1, 1.0, %v5025_v46  ;;  %v3420_v36 = vsel %vm5075_vm3, 1.0, %v5025_v46  ;;  %v2853_v4 = vpop.eup %2852  ;;  %vm741_vm5 = vcmp.ne.f32.partialorder %v3405_v29, 0.0  ;;  %vm725_vm6 = vcmp.ne.f32.partialorder %v3432_v60, 0.0 }
  0xc6   : > { %1155 = vperm.xlu0 %2674, %v2845_v21   ;;  %5143 = vst [vmem:[#allocation27_spill] sm:$0xff] %v3412_v34  ;;  %v3455_v11 = vsel %vm741_vm5, 1.0, %v5025_v46  ;;  %v3488_v54 = vsel %vm725_vm6, 1.0, %v5025_v46  ;;  %v1385_v41 = vsel %vm741_vm5, 1, %v5022_v32 }
  0xc7   : > { %1160 = vperm.xlu1 %2672, %v2847_v26   ;;  %1532 = vperm.xlu2 %2673, %v1399_v25   ;;  %5144 = vst [vmem:[#allocation28_spill] sm:$0xff] %v3420_v36  ;;  %v820_v25 = vsel %vm756_vm1, %v3385_v23, 1.0  ;;  %v2855_v26 = vpop.eup %2854 }
  0xc8   : > { %5145 = vst [vmem:[#allocation29_spill] sm:$0xff] %v3455_v11  ;;  %2858 = vrcp.f32 %v820_v25  ;;  %2528 = vmatmul.msk.bf16.gmra.mxu1 %vm448_vm2, %v2566_v5 }
  0xc9   : > { %5147 = vst [vmem:[#allocation31_spill] sm:$0xff] %v3488_v54  ;;  %2860 = vrcp.f32 %v803_v42 }
  0xcb   : > { %v3465_v22 = vpop.f32.mrf.mxu2  ;;  %v3500_v7 = vpop.f32.mrf.mxu3 }
  0xcc   : > { %v3436_v62 = vpop.f32.mrf.mxu1  ;;  %v3467_v24 = vpop.f32.mrf.mxu0  ;;  %vm757_vm9 = vcmp.ne.f32.partialorder %v3465_v22, 0.0  ;;  %vm5087_vm12 = vcmp.ne.f32.partialorder %v3500_v7, 0.0 }
  0xcd   : > { %vm742_vm4 = vcmp.ne.f32.partialorder %v3436_v62, 0.0  ;;  %vm726_vm7 = vcmp.ne.f32.partialorder %v3467_v24, 0.0  ;;  %v3526_v49 = vsel %vm5087_vm12, 1.0, %v5025_v46 }
  0xce   : > { %920 = vperm.xlu0 %2674, %v2851_v44   ;;  %v3460_v12 = vsel %vm742_vm4, 1.0, %v5025_v46  ;;  %v2857_v44 = vpop.eup %2856  ;;  %v3493_v63 = vsel %vm726_vm7, 1.0, %v5025_v46  ;;  %5151 = vst [vmem:[#allocation35_spill] sm:$0xff] %v3526_v49  ;;  %v1386_v52 = vsel %vm742_vm4, 1, %v5022_v32 }
  0xcf   : > { %1487 = vperm.xlu2 %2673, %v1384_v45   ;;  %925 = vperm.xlu1 %2672, %v2849_v43   ;;  %5146 = vst [vmem:[#allocation30_spill] sm:$0xff] %v3460_v12  ;;  %v1369_v43 = vsel %vm725_vm6, 1, %v5022_v32  ;;  %v788_v45 = vsel %vm724_vm14, %v3345_v10, 1.0  ;;  %v2859_v13 = vpop.eup %2858 }
  0xd0   : > { %5148 = vst [vmem:[#allocation32_spill] sm:$0xff] %v3493_v63  ;;  %2862 = vrcp.f32 %v788_v45  ;;  %v2861_v25 = vpop.eup %2860 }
  0xd4   : > { %v3550_v21 = vpop.f32.mrf.mxu0 }
  0xd6   : > { %1436 = vperm.xlu0 %2674, %v1367_v1   ;;  %v2863_v42 = vpop.eup %2862 }
  0xd7   : > { %1165 = vperm.xlu2 %2673, %v2853_v4   ;;  %1439 = vperm.xlu1 %2672, %v1368_v8   ;;  %v3498_v4 = vpop.f32.mrf.mxu2  ;;  %v789_v8 = vsel %vm725_vm6, %v3432_v60, 1.0 }
  0xd8   : > { %vm758_vm11 = vcmp.ne.f32.partialorder %v3498_v4, 0.0  ;;  %2864 = vrcp.f32 %v789_v8  ;;  %v3528_v8 = vpop.f32.mrf.mxu3 }
  0xd9   : > { %v1402_v19 = vsel %vm758_vm11, 1, %v5022_v32 }
  0xde   : > { %1080 = vperm.xlu0 %2674, %v2857_v44   ;;  %v3518_v44 = vsel %vm758_vm11, 1.0, %v5025_v46 }
  0xdf   : > { %1085 = vperm.xlu1 %2672, %v2855_v26   ;;  %1442 = vperm.xlu2 %2673, %v1369_v43   ;;  %v804_v26 = vsel %vm740_vm13, %v3343_v9, 1.0  ;;  %v3513_v43 = vsel %vm757_vm9, 1.0, %v5025_v46  ;;  %5150 = vst [vmem:[#allocation34_spill] sm:$0xff] %v3518_v44  ;;  %vm5053_vm13 = vcmp.ne.f32.partialorder %v3528_v8, 0.0  ;;  %v3546_v45 = vpop.f32.mrf.mxu2 }
  0xe0   : > { %5149 = vst [vmem:[#allocation33_spill] sm:$0xff] %v3513_v43  ;;  %2866 = vrcp.f32 %v804_v26  ;;  %v3537_v26 = vsel %vm5053_vm13, 1.0, %v5025_v46  ;;  %vm759_vm14 = vcmp.ne.f32.partialorder %v3546_v45, 0.0 }
  0xe1   : > { %5152 = vst [vmem:[#allocation36_spill] sm:$0xff] %v3537_v26  ;;  %v3565_v5 = vsel %vm759_vm14, 1.0, %v5025_v46 }
  0xe2   : > { %5153 = vst [vmem:[#allocation37_spill] sm:$0xff] %v3565_v5 }
  0xe6   : > { %1005 = vperm.xlu0 %2674, %v2861_v25   ;;  %v805_v25 = vsel %vm741_vm5, %v3405_v29, 1.0  ;;  %vm727_vm5 = vcmp.ne.f32.partialorder %v3550_v21, 0.0 }
  0xe7   : > { %930 = vperm.xlu1 %2672, %v2863_v42   ;;  %1090 = vperm.xlu2 %2673, %v2859_v13   ;;  %v2865_v13 = vpop.eup %2864  ;;  %v1400_v42 = vsel %vm756_vm1, 1, %v5022_v32  ;;  %2868 = vrcp.f32 %v805_v25  ;;  %v3567_v35 = vpop.f32.mrf.mxu2  ;;  %v3602_v53 = vsel %vm727_vm5, 1.0, %v5025_v46  ;;  %v791_v36 = vsel %vm727_vm5, %v3550_v21, 1.0 }
  0xe8   : > { %v2867_v0 = vpop.eup %2866  ;;  %vm760_vm15 = vcmp.ne.f32.partialorder %v3567_v35, 0.0  ;;  %5155 = vst [vmem:[#allocation39_spill] sm:$0xff] %v3602_v53 }
  0xed   : > { %v2869_v25 = vpop.eup %2868 }
  0xee   : > { %1535 = vperm.xlu0 %2674, %v1400_v42   ;;  %v3573_v42 = vsel %vm760_vm15, 1.0, %v5025_v46 }
  0xef   : > { %1010 = vperm.xlu1 %2672, %v2867_v0   ;;  %935 = vperm.xlu2 %2673, %v2865_v13   ;;  %v836_v0 = vsel %vm5075_vm3, %v3407_v33, 1.0  ;;  %v1401_v13 = vsel %vm757_vm9, 1, %v5022_v32  ;;  %5154 = vst [vmem:[#allocation38_spill] sm:$0xff] %v3573_v42  ;;  %v3616_v32 = vpop.f32.mrf.mxu3 }
  0xf0   : > { %2870 = vrcp.f32 %v836_v0  ;;  %v3581_v0 = vpop.f32.mrf.mxu0 }
  0xf1   : > { %vm728_vm1 = vcmp.ne.f32.partialorder %v3581_v0, 0.0 }
  0xf2   : > { %v3607_v20 = vsel %vm728_vm1, 1.0, %v5025_v46  ;;  %v821_v46 = vsel %vm757_vm9, %v3465_v22, 1.0 }
  0xf3   : > { %5156 = vst [vmem:[#allocation40_spill] sm:$0xff] %v3607_v20 }
  0xf6   : > { %1490 = vperm.xlu0 %2674, %v1385_v41   ;;  %v3577_v41 = vpop.f32.mrf.mxu1  ;;  %v2871_v1 = vpop.eup %2870 }
  0xf7   : > { %1538 = vperm.xlu1 %2672, %v1401_v13   ;;  %1015 = vperm.xlu2 %2673, %v2869_v25   ;;  %v837_v13 = vsel %vm5087_vm12, %v3500_v7, 1.0  ;;  %v790_v25 = vsel %vm726_vm7, %v3467_v24, 1.0  ;;  %vm743_vm6 = vcmp.ne.f32.partialorder %v3577_v41, 0.0  ;;  %v3648_v30 = vpop.f32.mrf.mxu3 }
  0xf8   : > { %2872 = vrcp.f32 %v837_v13  ;;  %v3674_v56 = vpop.f32.mrf.mxu0  ;;  %v807_v61 = vsel %vm743_vm6, %v3577_v41, 1.0 }
  0xf9   : > { %2874 = vrcp.f32 %v790_v25  ;;  %v5159_v25 = vmov 0.0  }
  0xfa   : > { %v3628_v13 = vsel %vm743_vm6, 1.0, %v5159_v25  ;;  %2876 = vrcp.f32 %v821_v46  ;;  %v822_v46 = vsel %vm758_vm11, %v3498_v4, 1.0 }
  0xfb   : > { %5160 = vst [vmem:[#allocation42_spill] sm:$0xff] %v3628_v13 }
  0xfe   : > { %1170 = vperm.xlu0 %2674, %v2871_v1   ;;  %v3613_v37 = vpop.f32.mrf.mxu1  ;;  %v2873_v55 = vpop.eup %2872 }
  0xff   : > { %1493 = vperm.xlu1 %2672, %v1386_v52   ;;  %1541 = vperm.xlu2 %2673, %v1402_v19   ;;  %vm744_vm2 = vcmp.ne.f32.partialorder %v3613_v37, 0.0  ;;  %v1370_v52 = vsel %vm726_vm7, 1, %v5158_v40  ;;  %v2875_v19 = vpop.eup %2874  ;;  %vm5057_vm7 = vcmp.ne.f32.partialorder %v3616_v32, 0.0 }
 0x100   : > { %v3646_v39 = vsel %vm5057_vm7, 1.0, %v5159_v25  ;;  %v2877_v31 = vpop.eup %2876  ;;  %v808_v2 = vsel %vm744_vm2, %v3613_v37, 1.0 }
 0x101   : > { %v3611_v1 = vpop.permute.xlu2 %1478  ;;  %5163 = vst [vmem:[#allocation45_spill] sm:$0xff] %v3646_v39  ;;  %v3736_v39 = vpop.f32.mrf.mxu2 }
 0x102   : > { %5157 = vst [vmem:[#allocation41_spill] sm:$0xff] %v3611_v1  ;;  %v3633_v1 = vsel %vm744_vm2, 1.0, %v5159_v25 }
 0x103   : > { %5161 = vst [vmem:[#allocation43_spill] sm:$0xff] %v3633_v1 }
 0x106   : > { %1445 = vperm.xlu0 %2674, %v1370_v52   ;;  %v806_v52 = vsel %vm742_vm4, %v3436_v62, 1.0  ;;  %vm5058_vm4 = vcmp.ne.f32.partialorder %v3648_v30, 0.0  ;;  %v3672_v26 = vpop.f32.mrf.mxu1 }
 0x107   : > { %1175 = vperm.xlu1 %2672, %v2873_v55   ;;  %940 = vperm.xlu2 %2673, %v2875_v19   ;;  %v1387_v55 = vsel %vm743_vm6, 1, %v5158_v40  ;;  %v1371_v19 = vsel %vm727_vm5, 1, %v5158_v40  ;;  %v3666_v28 = vsel %vm5058_vm4, 1.0, %v5159_v25  ;;  %2878 = vrcp.f32 %v806_v52 }
 0x108   : > { %5164 = vst [vmem:[#allocation46_spill] sm:$0xff] %v3666_v28  ;;  %2880 = vrcp.f32 %v822_v46  ;;  %vm729_vm5 = vcmp.ne.f32.partialorder %v3674_v56, 0.0 }
 0x109   : > { %v3638_v58 = vpop.permute.xlu2 %1433  ;;  %v793_v34 = vsel %vm729_vm5, %v3674_v56, 1.0 }
 0x10a   : > { %5162 = vst [vmem:[#allocation44_spill] sm:$0xff] %v3638_v58  ;;  %v838_v58 = vsel %vm5053_vm13, %v3528_v8, 1.0 }
 0x10b   : > { %2882 = vrcp.f32 %v838_v58 }
 0x10c   : > { %2884 = vrcp.f32 %v807_v61 }
 0x10d   : > { %v2879_v5 = vpop.eup %2878  ;;  %2886 = vrcp.f32 %v791_v36 }
 0x10e   : > { %1095 = vperm.xlu0 %2674, %v2877_v31   ;;  %v2881_v52 = vpop.eup %2880 }
 0x10f   : > { %1496 = vperm.xlu2 %2673, %v1387_v55   ;;  %1448 = vperm.xlu1 %2672, %v1371_v19   ;;  %v3683_v55 = vpop.f32.mrf.mxu1  ;;  %v3685_v19 = vpop.f32.mrf.mxu0 }
 0x110   : > { %vm746_vm9 = vcmp.ne.f32.partialorder %v3683_v55, 0.0  ;;  %vm730_vm11 = vcmp.ne.f32.partialorder %v3685_v19, 0.0 }
 0x111   : > { %v3670_v49 = vpop.permute.xlu2 %1075  ;;  %v2883_v31 = vpop.eup %2882  ;;  %v3716_v36 = vsel %vm730_vm11, 1.0, %v5159_v25 }
 0x112   : > { %5165 = vst [vmem:[#allocation47_spill] sm:$0xff] %v3670_v49  ;;  %v1403_v49 = vsel %vm759_vm14, 1, %v5158_v40  ;;  %v2885_v61 = vpop.eup %2884 }
 0x113   : > { %5170 = vst [vmem:[#allocation52_spill] sm:$0xff] %v3716_v36  ;;  %v2887_v28 = vpop.eup %2886 }
 0x116   : > { %1020 = vperm.xlu0 %2674, %v2879_v5   ;;  %v823_v5 = vsel %vm759_vm14, %v3546_v45, 1.0  ;;  %vm745_vm14 = vcmp.ne.f32.partialorder %v3672_v26, 0.0 }
 0x117   : > { %1180 = vperm.xlu2 %2673, %v2883_v31   ;;  %1100 = vperm.xlu1 %2672, %v2881_v52   ;;  %v792_v52 = vsel %vm728_vm1, %v3581_v0, 1.0  ;;  %v1372_v31 = vsel %vm728_vm1, 1, %v5158_v40  ;;  %2888 = vrcp.f32 %v823_v5  ;;  %vm761_vm1 = vcmp.ne.f32.partialorder %v3736_v39, 0.0  ;;  %v3786_v1 = vpop.f32.mrf.mxu1 }
 0x118   : > { %2890 = vrcp.f32 %v792_v52  ;;  %v809_v36 = vsel %vm745_vm14, %v3672_v26, 1.0 }
 0x119   : > { %v3679_v46 = vpop.permute.xlu1 %1430  ;;  %v3681_v58 = vpop.permute.xlu2 %1000  ;;  %2892 = vrcp.f32 %v808_v2  ;;  %v1389_v2 = vsel %vm745_vm14, 1, %v5158_v40 }
 0x11a   : > { %5166 = vst [vmem:[#allocation48_spill] sm:$0xff] %v3679_v46 }
 0x11b   : > { %5167 = vst [vmem:[#allocation49_spill] sm:$0xff] %v3681_v58  ;;  %v3709_v58 = vsel %vm729_vm5, 1.0, %v5159_v25 }
 0x11c   : > { %5168 = vst [vmem:[#allocation50_spill] sm:$0xff] %v3709_v58 }
 0x11d   : > { %v2889_v42 = vpop.eup %2888 }
 0x11e   : > { %1544 = vperm.xlu0 %2674, %v1403_v49   ;;  %v3721_v49 = vsel %vm745_vm14, 1.0, %v5159_v25  ;;  %v2891_v3 = vpop.eup %2890 }
 0x11f   : > { %1025 = vperm.xlu1 %2672, %v2885_v61   ;;  %1451 = vperm.xlu2 %2673, %v1372_v31   ;;  %5171 = vst [vmem:[#allocation53_spill] sm:$0xff] %v3721_v49  ;;  %v3726_v61 = vsel %vm746_vm9, 1.0, %v5159_v25  ;;  %v2893_v43 = vpop.eup %2892 }
 0x120   : > { %v3711_v46 = vpop.permute.xlu0 %1526  ;;  %5172 = vst [vmem:[#allocation54_spill] sm:$0xff] %v3726_v61 }
 0x121   : > { %5169 = vst [vmem:[#allocation51_spill] sm:$0xff] %v3711_v46  ;;  %v3728_v5 = vpop.permute.xlu1 %995  ;;  %v3730_v52 = vpop.permute.xlu2 %1532  ;;  %v839_v46 = vsel %vm5057_vm7, %v3616_v32, 1.0 }
 0x122   : > { %5173 = vst [vmem:[#allocation55_spill] sm:$0xff] %v3728_v5  ;;  %2894 = vrcp.f32 %v839_v46 }
 0x123   : > { %2896 = vrcp.f32 %v793_v34 }
 0x126   : > { %945 = vperm.xlu0 %2674, %v2887_v28   ;;  %v3754_v28 = vpop.f32.mrf.mxu3 }
 0x127   : > { %1105 = vperm.xlu2 %2673, %v2889_v42   ;;  %950 = vperm.xlu1 %2672, %v2891_v3   ;;  %5176 = vst [vmem:[#allocation58_spill] sm:$0xff] %v3754_v28  ;;  %v3756_v3 = vpop.f32.mrf.mxu2  ;;  %v3764_v42 = vsel %vm761_vm1, 1.0, %v5159_v25 }
 0x128   : > { %v3741_v5 = vpop.permute.xlu0 %915  ;;  %5177 = vst [vmem:[#allocation59_spill] sm:$0xff] %v3764_v42  ;;  %vm5110_vm6 = vcmp.ne.f32.partialorder %v3756_v3, 0.0  ;;  %v2895_v34 = vpop.eup %2894 }
 0x129   : > { %5174 = vst [vmem:[#allocation56_spill] sm:$0xff] %v3741_v5  ;;  %v3743_v27 = vpop.permute.xlu1 %1529  ;;  %v3745_v31 = vpop.permute.xlu2 %1487  ;;  %v1388_v5 = vsel %vm744_vm2, 1, %v5158_v40  ;;  %v3776_v44 = vsel %vm5110_vm6, 1.0, %v5159_v25  ;;  %vm5061_vm2 = vcmp.ne.f32.partialorder %v3754_v28, 0.0 }
 0x12a   : > { %5175 = vst [vmem:[#allocation57_spill] sm:$0xff] %v3743_v27  ;;  %v840_v27 = vsel %vm5058_vm4, %v3648_v30, 1.0 }
 0x12b   : > { %5178 = vst [vmem:[#allocation60_spill] sm:$0xff] %v3776_v44  ;;  %2898 = vrcp.f32 %v840_v27  ;;  %v3796_v27 = vsel %vm5061_vm2, 1.0, %v5159_v25  ;;  %v3815_v44 = vpop.f32.mrf.mxu1 }
 0x12c   : > { %5182 = vst [vmem:[#allocation64_spill] sm:$0xff] %v3796_v27  ;;  %vm748_vm7 = vcmp.ne.f32.partialorder %v3815_v44, 0.0  ;;  %v1390_v27 = vsel %vm746_vm9, 1, %v5158_v40 }
 0x12e   : > { %1499 = vperm.xlu0 %2674, %v1388_v5   ;;  %v3789_v5 = vpop.f32.mrf.mxu0  ;;  %v3791_v49 = vpop.f32.mrf.mxu3 }
 0x12f   : > { %1030 = vperm.xlu2 %2673, %v2893_v43   ;;  %1502 = vperm.xlu1 %2672, %v1389_v2   ;;  %v2897_v43 = vpop.eup %2896  ;;  %vm5085_vm13 = vcmp.ne.f32.partialorder %v3791_v49, 0.0  ;;  %v3868_v17 = vpop.f32.mrf.mxu2 }
 0x130   : > { %v3780_v11 = vpop.permute.xlu0 %1481  ;;  %v3802_v46 = vsel %vm5085_vm13, 1.0, %v5159_v25  ;;  %vm763_vm14 = vcmp.ne.f32.partialorder %v3868_v17, 0.0 }
 0x131   : > { %5179 = vst [vmem:[#allocation61_spill] sm:$0xff] %v3780_v11  ;;  %v3782_v12 = vpop.permute.xlu1 %1484  ;;  %v3784_v13 = vpop.permute.xlu2 %1165 }
 0x132   : > { %5180 = vst [vmem:[#allocation62_spill] sm:$0xff] %v3782_v12  ;;  %v2899_v2 = vpop.eup %2898 }
 0x133   : > { %5181 = vst [vmem:[#allocation63_spill] sm:$0xff] %v3784_v13 }
 0x134   : > { %5183 = vst [vmem:[#allocation65_spill] sm:$0xff] %v3802_v46  ;;  %v1374_v46 = vsel %vm730_vm11, 1, %v5158_v40 }
 0x136   : > { %1185 = vperm.xlu0 %2674, %v2895_v34   ;;  %v825_v34 = vsel %vm761_vm1, %v3736_v39, 1.0  ;;  %v3824_v11 = vpop.f32.mrf.mxu0  ;;  %v3866_v51 = vpop.f32.mrf.mxu3 }
 0x137   : > { %1190 = vperm.xlu1 %2672, %v2899_v2   ;;  %955 = vperm.xlu2 %2673, %v2897_v43   ;;  %v841_v2 = vsel %vm5061_vm2, %v3754_v28, 1.0  ;;  %v1373_v43 = vsel %vm729_vm5, 1, %v5158_v40  ;;  %vm732_vm4 = vcmp.ne.f32.partialorder %v3824_v11, 0.0  ;;  %2900 = vrcp.f32 %v825_v34 }
 0x138   : > { %v3806_v12 = vpop.permute.xlu0 %1155  ;;  %vm747_vm5 = vcmp.ne.f32.partialorder %v3786_v1, 0.0  ;;  %2902 = vrcp.f32 %v841_v2  ;;  %vm731_vm2 = vcmp.ne.f32.partialorder %v3789_v5, 0.0  ;;  %v3846_v34 = vsel %vm748_vm7, 1.0, %v5159_v25 }
 0x139   : > { %5184 = vst [vmem:[#allocation66_spill] sm:$0xff] %v3806_v12  ;;  %v3808_v13 = vpop.permute.xlu1 %1160  ;;  %v3810_v42 = vpop.permute.xlu2 %1442  ;;  %v824_v12 = vsel %vm760_vm15, %v3567_v35, 1.0  ;;  %v3851_v2 = vsel %vm731_vm2, 1.0, %v5159_v25 }
 0x13a   : > { %5185 = vst [vmem:[#allocation67_spill] sm:$0xff] %v3808_v13  ;;  %v3841_v13 = vsel %vm747_vm5, 1.0, %v5159_v25  ;;  %2904 = vrcp.f32 %v824_v12  ;;  %v810_v12 = vsel %vm746_vm9, %v3683_v55, 1.0  ;;  %vm5086_vm9 = vcmp.ne.f32.partialorder %v3866_v51, 0.0 }
 0x13b   : > { %5186 = vst [vmem:[#allocation68_spill] sm:$0xff] %v3841_v13  ;;  %2906 = vrcp.f32 %v809_v36  ;;  %v795_v36 = vsel %vm731_vm2, %v3789_v5, 1.0  ;;  %vm1625_vm3 = vcmp.eq.s32.totalorder %v3810_v42, 1  ;;  %v3953_v42 = vpop.f32.mrf.mxu1 }
 0x13c   : > { %5187 = vst [vmem:[#allocation69_spill] sm:$0xff] %v3846_v34  ;;  %2908 = vrcp.f32 %v810_v12  ;;  %vm749_vm12 = vcmp.ne.f32.partialorder %v3953_v42, 0.0 }
 0x13d   : > { %5188 = vst [vmem:[#allocation70_spill] sm:$0xff] %v3851_v2  ;;  %v2901_v15 = vpop.eup %2900  ;;  %2910 = vrcp.f32 %v795_v36  ;;  %v811_v36 = vsel %vm747_vm5, %v3786_v1, 1.0 }
 0x13e   : > { %1454 = vperm.xlu0 %2674, %v1373_v43   ;;  %v3856_v43 = vsel %vm732_vm4, 1.0, %v5159_v25  ;;  %v2903_v58 = vpop.eup %2902  ;;  %v3939_v28 = vpop.f32.mrf.mxu0  ;;  %5202 = vst [vmem:[#allocation84_spill] sm:$0xff] %v3953_v42 }
 0x13f   : > { %1505 = vperm.xlu2 %2673, %v1390_v27   ;;  %1457 = vperm.xlu1 %2672, %v1374_v46   ;;  %5189 = vst [vmem:[#allocation71_spill] sm:$0xff] %v3856_v43 }
 0x140   : > { %v3860_v48 = vpop.permute.xlu0 %920  ;;  %v2905_v13 = vpop.eup %2904  ;;  %5199 = vst [vmem:[#allocation81_spill] sm:$0xff] %v3939_v28 }
 0x141   : > { %5190 = vst [vmem:[#allocation72_spill] sm:$0xff] %v3860_v48  ;;  %v926_v27 = vpop.permute.xlu1 %925  ;;  %v3864_v46 = vpop.permute.xlu2 %1090  ;;  %v3880_v48 = vld [vmem:[%s5019_s2] ss:$0 sm:$0xff] }
 0x142   : > { %v1235_v61 = vmul.f32 %v926_v27, %v3302_v59 }
 0x144   : > { %v1303_v34 = vadd.f32 %v3880_v48, %v1235_v61  ;;  %v3906_v61 = vsel %vm763_vm14, 1.0, %v5159_v25 }
 0x145   : > { %5194 = vst [vmem:[#allocation76_spill] sm:$0xff] %v3906_v61 }
 0x146   : > { %1110 = vperm.xlu0 %2674, %v2905_v13   ;;  %v3895_v13 = vpop.f32.mrf.mxu3 }
 0x147   : > { %1195 = vperm.xlu2 %2673, %v2903_v58   ;;  %1115 = vperm.xlu1 %2672, %v2901_v15   ;;  %v3893_v15 = vsel %vm5086_vm9, 1.0, %v5159_v25  ;;  %5193 = vst [vmem:[#allocation75_spill] sm:$0xff] %v3895_v13  ;;  %v794_v58 = vsel %vm730_vm11, %v3685_v19, 1.0 }
 0x148   : > { %v1437_v2 = vpop.permute.xlu0 %1436  ;;  %5192 = vst [vmem:[#allocation74_spill] sm:$0xff] %v3893_v15  ;;  %2912 = vrcp.f32 %v794_v58 }
 0x149   : > { %vm1623_vm0 = vcmp.eq.s32.totalorder %v1437_v2, 1  ;;  %v3884_v59 = vpop.permute.xlu1 %1439  ;;  %v936_v27 = vpop.permute.xlu2 %935  ;;  %v1375_v2 = vsel %vm731_vm2, 1, %v5158_v40 }
 0x14a   : > { %v3887_v43 = vsel %vm1623_vm0, %v1303_v34, 0.0  ;;  %v1237_v14 = vmul.f32 %v936_v27, %v3432_v60  ;;  %v3908_v60 = vpop.f32.mrf.mxu2  ;;  %vm5092_vm0 = vcmp.ne.f32.partialorder %v3895_v13, 0.0  ;;  %v2907_v27 = vpop.eup %2906 }
 0x14b   : > { %5191 = vst [vmem:[#allocation73_spill] sm:$0xff] %v3887_v43  ;;  %vm764_vm11 = vcmp.ne.f32.partialorder %v3908_v60, 0.0  ;;  %v3919_v12 = vsel %vm5092_vm0, 1.0, %v5159_v25  ;;  %v826_v43 = vsel %vm5110_vm6, %v3756_v3, 1.0  ;;  %v2909_v54 = vpop.eup %2908 }
 0x14c   : > { %v1305_v34 = vadd.f32 %v3880_v48, %v1237_v14  ;;  %5195 = vst [vmem:[#allocation77_spill] sm:$0xff] %v3919_v12  ;;  %v3928_v14 = vsel %vm764_vm11, 1.0, %v5159_v25  ;;  %2914 = vrcp.f32 %v826_v43 }
 0x14d   : > { %5196 = vst [vmem:[#allocation78_spill] sm:$0xff] %v3928_v14  ;;  %2916 = vrcp.f32 %v811_v36 }
 0x14e   : > { %v3932_v63 = vsel %vm1625_vm3, %v1305_v34, 0.0  ;;  %1035 = vperm.xlu0 %2674, %v2907_v27   ;;  %v2911_v34 = vpop.eup %2910  ;;  %vm1655_vm3 = vcmp.eq.s32.totalorder %v3730_v52, 1  ;;  %v843_v52 = vsel %vm5086_vm9, %v3866_v51, 1.0  ;;  %vm1640_vm9 = vcmp.eq.s32.totalorder %v3745_v31, 1 }
 0x14f   : > { %5197 = vst [vmem:[#allocation79_spill] sm:$0xff] %v3932_v63  ;;  %1040 = vperm.xlu1 %2672, %v2909_v54   ;;  %1460 = vperm.xlu2 %2673, %v1375_v2   ;;  %v2913_v18 = vpop.eup %2912  ;;  %2918 = vrcp.f32 %v843_v52 }
 0x150   : > { %v3936_v53 = vpop.permute.xlu0 %1080 }
 0x151   : > { %5198 = vst [vmem:[#allocation80_spill] sm:$0xff] %v3936_v53  ;;  %v1086_v20 = vpop.permute.xlu1 %1085  ;;  %v1016_v47 = vpop.permute.xlu2 %1015 }
 0x152   : > { %v1267_v50 = vmul.f32 %v1086_v20, %v3335_v6  ;;  %v2915_v54 = vpop.eup %2914  ;;  %v1253_v63 = vmul.f32 %v1016_v47, %v3405_v29 }
 0x153   : > { %v2917_v36 = vpop.eup %2916 }
 0x154   : > { %v1335_v27 = vadd.f32 %v3880_v48, %v1267_v50  ;;  %v3955_v50 = vpop.f32.mrf.mxu0  ;;  %v1321_v29 = vadd.f32 %v3880_v48, %v1253_v63  ;;  %v844_v63 = vsel %vm5092_vm0, %v3895_v13, 1.0 }
 0x155   : > { %5203 = vst [vmem:[#allocation85_spill] sm:$0xff] %v3955_v50  ;;  %vm734_vm2 = vcmp.ne.f32.partialorder %v3955_v50, 0.0 }
 0x156   : > { %v3946_v43 = vsel %vm1655_vm3, %v1335_v27, 0.0  ;;  %960 = vperm.xlu0 %2674, %v2913_v18   ;;  %v1391_v18 = vsel %vm747_vm5, 1, %v5158_v40  ;;  %vm1624_vm3 = vcmp.eq.s32.totalorder %v3884_v59, 1  ;;  %vm733_vm5 = vcmp.ne.f32.partialorder %v3939_v28, 0.0 }
 0x157   : > { %5200 = vst [vmem:[#allocation82_spill] sm:$0xff] %v3946_v43  ;;  %1120 = vperm.xlu2 %2673, %v2915_v54   ;;  %965 = vperm.xlu1 %2672, %v2911_v34   ;;  %v1268_v34 = vmul.f32 %v3864_v46, %v3385_v23  ;;  %v796_v54 = vsel %vm732_vm4, %v3824_v11, 1.0  ;;  %v1392_v23 = vsel %vm748_vm7, 1, %v5158_v40  ;;  %v3983_v46 = vsel %vm733_vm5, 1.0, %v5159_v25 }
 0x158   : > { %v3948_v6 = vpop.permute.xlu0 %1005  ;;  %5205 = vst [vmem:[#allocation87_spill] sm:$0xff] %v3983_v46  ;;  %v3988_v59 = vsel %vm734_vm2, 1.0, %v5159_v25 }
 0x159   : > { %5201 = vst [vmem:[#allocation83_spill] sm:$0xff] %v3948_v6  ;;  %v931_v20 = vpop.permute.xlu1 %930  ;;  %v3950_v58 = vpop.permute.xlu2 %1541 }
 0x15a   : > { %v1236_v2 = vmul.f32 %v931_v20, %v3345_v10  ;;  %v842_v10 = vsel %vm5085_vm13, %v3791_v49, 1.0  ;;  %5206 = vst [vmem:[#allocation88_spill] sm:$0xff] %v3988_v59  ;;  %vm1658_vm10 = vcmp.eq.s32.totalorder %v3950_v58, 1 }
 0x15b   : > { %2920 = vrcp.f32 %v842_v10  ;;  %v3996_v10 = vpop.f32.mrf.mxu1 }
 0x15c   : > { %v1304_v27 = vadd.f32 %v3880_v48, %v1236_v2  ;;  %v1336_v2 = vadd.f32 %v3880_v48, %v1268_v34  ;;  %2922 = vrcp.f32 %v796_v54  ;;  %5208 = vst [vmem:[#allocation90_spill] sm:$0xff] %v3996_v10  ;;  %vm750_vm13 = vcmp.ne.f32.partialorder %v3996_v10, 0.0 }
 0x15d   : > { %v4015_v47 = vsel %vm750_vm13, 1.0, %v5159_v25 }
 0x15e   : > { %v3975_v20 = vsel %vm1624_vm3, %v1304_v27, 0.0  ;;  %1508 = vperm.xlu0 %2674, %v1391_v18   ;;  %5212 = vst [vmem:[#allocation94_spill] sm:$0xff] %v4015_v47  ;;  %v1377_v18 = vsel %vm733_vm5, 1, %v5158_v40 }
 0x15f   : > { %5204 = vst [vmem:[#allocation86_spill] sm:$0xff] %v3975_v20  ;;  %1045 = vperm.xlu2 %2673, %v2917_v36   ;;  %1511 = vperm.xlu1 %2672, %v1392_v23   ;;  %v3998_v23 = vpop.f32.mrf.mxu3  ;;  %v2919_v20 = vpop.eup %2918 }
 0x160   : > { %v1536_v52 = vpop.permute.xlu0 %1535  ;;  %5209 = vst [vmem:[#allocation91_spill] sm:$0xff] %v3998_v23 }
 0x161   : > { %vm1656_vm3 = vcmp.eq.s32.totalorder %v1536_v52, 1  ;;  %v1011_v27 = vpop.permute.xlu1 %1010  ;;  %v941_v43 = vpop.permute.xlu2 %940 }
 0x162   : > { %v3993_v53 = vsel %vm1656_vm3, %v1336_v2, 0.0  ;;  %v1252_v36 = vmul.f32 %v1011_v27, %v3343_v9  ;;  %v2921_v54 = vpop.eup %2920  ;;  %v4010_v9 = vsel %vm749_vm12, 1.0, %v5159_v25  ;;  %vm5108_vm3 = vcmp.ne.f32.partialorder %v3998_v23, 0.0 }
 0x163   : > { %5207 = vst [vmem:[#allocation89_spill] sm:$0xff] %v3993_v53  ;;  %v2923_v2 = vpop.eup %2922  ;;  %v828_v53 = vsel %vm764_vm11, %v3908_v60, 1.0  ;;  %v4068_v61 = vpop.f32.mrf.mxu1 }
 0x164   : > { %v1320_v34 = vadd.f32 %v3880_v48, %v1252_v36  ;;  %5211 = vst [vmem:[#allocation93_spill] sm:$0xff] %v4010_v9 }
 0x166   : > { %v4005_v52 = vsel %vm1640_vm9, %v1320_v34, 0.0  ;;  %1200 = vperm.xlu0 %2674, %v2921_v54  }
 0x167   : > { %5210 = vst [vmem:[#allocation92_spill] sm:$0xff] %v4005_v52  ;;  %1205 = vperm.xlu1 %2672, %v2919_v20   ;;  %970 = vperm.xlu2 %2673, %v2923_v2   ;;  %v827_v20 = vsel %vm763_vm14, %v3868_v17, 1.0  ;;  %v4033_v2 = vpop.f32.mrf.mxu2  ;;  %v4035_v27 = vpop.f32.mrf.mxu3 }
 0x168   : > { %v1491_v31 = vpop.permute.xlu0 %1490  ;;  %2924 = vrcp.f32 %v827_v20 }
 0x169   : > { %vm1641_vm9 = vcmp.eq.s32.totalorder %v1491_v31, 1  ;;  %v4020_v36 = vpop.permute.xlu1 %1538  ;;  %v4022_v34 = vpop.permute.xlu2 %1496  ;;  %v1393_v31 = vsel %vm749_vm12, 1, %v5158_v40  ;;  %2926 = vrcp.f32 %v844_v63  ;;  %v813_v63 = vsel %vm749_vm12, %v3953_v42, 1.0 }
 0x16a   : > { %v4028_v54 = vsel %vm1641_vm9, %v1321_v29, 0.0  ;;  %v4046_v29 = vsel %vm5108_vm3, 1.0, %v5159_v25  ;;  %vm782_vm9 = vcmp.ne.f32.partialorder %v4035_v27, 0.0  ;;  %2928 = vrcp.f32 %v828_v53 }
 0x16b   : > { %5213 = vst [vmem:[#allocation95_spill] sm:$0xff] %v4028_v54  ;;  %v1376_v54 = vsel %vm732_vm4, 1, %v5158_v40  ;;  %v4058_v52 = vsel %vm782_vm9, 1.0, %v5159_v25  ;;  %vm5109_vm4 = vcmp.ne.f32.partialorder %v4033_v2, 0.0  ;;  %v812_v53 = vsel %vm748_vm7, %v3815_v44, 1.0 }
 0x16c   : > { %5214 = vst [vmem:[#allocation96_spill] sm:$0xff] %v4046_v29  ;;  %v4085_v20 = vsel %vm5109_vm4, 1.0, %v5159_v25  ;;  %2930 = vrcp.f32 %v813_v63  ;;  %v4102_v63 = vpop.f32.mrf.mxu1 }
 0x16d   : > { %5215 = vst [vmem:[#allocation97_spill] sm:$0xff] %v4058_v52  ;;  %2932 = vrcp.f32 %v812_v53  ;;  %vm752_vm7 = vcmp.ne.f32.partialorder %v4102_v63, 0.0 }
 0x16e   : > { %1463 = vperm.xlu0 %2674, %v1376_v54   ;;  %v4070_v54 = vpop.f32.mrf.mxu0  ;;  %v2925_v14 = vpop.eup %2924  ;;  %5218 = vst [vmem:[#allocation100_spill] sm:$0xff] %v4085_v20 }
 0x16f   : > { %1514 = vperm.xlu2 %2673, %v1393_v31   ;;  %1466 = vperm.xlu1 %2672, %v1377_v18   ;;  %v4076_v18 = vpop.f32.mrf.mxu2  ;;  %v1238_v31 = vmul.f32 %v941_v43, %v3467_v24 }
 0x170   : > { %v4062_v6 = vpop.permute.xlu0 %1170  ;;  %vm766_vm0 = vcmp.ne.f32.partialorder %v4076_v18, 0.0 }
 0x171   : > { %5216 = vst [vmem:[#allocation98_spill] sm:$0xff] %v4062_v6  ;;  %v4064_v15 = vpop.permute.xlu1 %1493  ;;  %v4066_v12 = vpop.permute.xlu2 %1180  ;;  %v4091_v52 = vsel %vm766_vm0, 1.0, %v5159_v25  ;;  %v1306_v43 = vadd.f32 %v3880_v48, %v1238_v31  ;;  %v798_v31 = vsel %vm734_vm2, %v3955_v50, 1.0 }
 0x172   : > { %5217 = vst [vmem:[#allocation99_spill] sm:$0xff] %v4066_v12  ;;  %v2927_v12 = vpop.eup %2926 }
 0x173   : > { %v2929_v29 = vpop.eup %2928  ;;  %5219 = vst [vmem:[#allocation101_spill] sm:$0xff] %v4091_v52  ;;  %v4152_v52 = vpop.f32.mrf.mxu3 }
 0x176   : > { %1125 = vperm.xlu0 %2674, %v2925_v14   ;;  %v4104_v46 = vpop.f32.mrf.mxu0 }
 0x177   : > { %1210 = vperm.xlu2 %2673, %v2927_v12   ;;  %1130 = vperm.xlu1 %2672, %v2929_v29   ;;  %v829_v12 = vsel %vm5109_vm4, %v4033_v2, 1.0  ;;  %vm736_vm8 = vcmp.ne.f32.partialorder %v4104_v46, 0.0  ;;  %v2931_v29 = vpop.eup %2930  ;;  %vm1642_vm4 = vcmp.eq.s32.totalorder %v4064_v15, 1 }
 0x178   : > { %v1446_v6 = vpop.permute.xlu0 %1445  ;;  %v2933_v53 = vpop.eup %2932  ;;  %v4124_v24 = vsel %vm736_vm8, 1.0, %v5159_v25  ;;  %2934 = vrcp.f32 %v829_v12 }
 0x179   : > { %vm1626_vm12 = vcmp.eq.s32.totalorder %v1446_v6, 1  ;;  %v4096_v9 = vpop.permute.xlu1 %1175  ;;  %v4098_v47 = vpop.permute.xlu2 %1451  ;;  %v797_v6 = vsel %vm733_vm5, %v3939_v28, 1.0  ;;  %5222 = vst [vmem:[#allocation104_spill] sm:$0xff] %v4124_v24  ;;  %vm751_vm5 = vcmp.ne.f32.partialorder %v4068_v61, 0.0 }
 0x17a   : > { %5220 = vst [vmem:[#allocation102_spill] sm:$0xff] %v4096_v9  ;;  %v4100_v14 = vsel %vm1626_vm12, %v1306_v43, 0.0  ;;  %v1378_v43 = vsel %vm734_vm2, 1, %v5158_v40  ;;  %vm735_vm12 = vcmp.ne.f32.partialorder %v4070_v54, 0.0  ;;  %2936 = vrcp.f32 %v797_v6 }
 0x17b   : > { %5221 = vst [vmem:[#allocation103_spill] sm:$0xff] %v4100_v14  ;;  %v4130_v14 = vsel %vm752_vm7, 1.0, %v5159_v25  ;;  %v4135_v20 = vsel %vm735_vm12, 1.0, %v5159_v25  ;;  %v4142_v12 = vsel %vm751_vm5, 1.0, %v5159_v25  ;;  %2938 = vrcp.f32 %v798_v31 }
 0x17c   : > { %5223 = vst [vmem:[#allocation105_spill] sm:$0xff] %v4130_v14  ;;  %vm1657_vm2 = vcmp.eq.s32.totalorder %v4020_v36, 1  ;;  %v845_v6 = vsel %vm5108_vm3, %v3998_v23, 1.0  ;;  %v1395_v14 = vsel %vm751_vm5, 1, %v5158_v40  ;;  %vm783_vm3 = vcmp.ne.f32.partialorder %v4152_v52, 0.0 }
 0x17d   : > { %5224 = vst [vmem:[#allocation106_spill] sm:$0xff] %v4135_v20 }
 0x17e   : > { %1050 = vperm.xlu0 %2674, %v2933_v53   ;;  %5225 = vst [vmem:[#allocation107_spill] sm:$0xff] %v4142_v12  ;;  %v2935_v20 = vpop.eup %2934  ;;  %v1394_v12 = vsel %vm750_vm13, 1, %v5158_v40 }
 0x17f   : > { %1055 = vperm.xlu1 %2672, %v2931_v29   ;;  %1469 = vperm.xlu2 %2673, %v1378_v43   ;;  %v4150_v43 = vpop.f32.mrf.mxu2 }
 0x180   : > { %v1096_v53 = vpop.permute.xlu0 %1095  ;;  %v2937_v24 = vpop.eup %2936 }
 0x181   : > { %v1269_v9 = vmul.f32 %v1096_v53, %v3465_v22  ;;  %v4145_v59 = vpop.permute.xlu1 %1448  ;;  %v1106_v50 = vpop.permute.xlu2 %1105  ;;  %v814_v22 = vsel %vm750_vm13, %v3996_v10, 1.0 }
 0x182   : > { %v2939_v53 = vpop.eup %2938  ;;  %2940 = vrcp.f32 %v814_v22 }
 0x183   : > { %v1337_v29 = vadd.f32 %v3880_v48, %v1269_v9  ;;  %2942 = vrcp.f32 %v845_v6 }
 0x185   : > { %v4155_v31 = vsel %vm1657_vm2, %v1337_v29, 0.0  ;;  %vm767_vm2 = vcmp.ne.f32.partialorder %v4150_v43, 0.0 }
 0x186   : > { %5226 = vst [vmem:[#allocation108_spill] sm:$0xff] %v4155_v31  ;;  %975 = vperm.xlu0 %2674, %v2937_v24   ;;  %v799_v24 = vsel %vm735_vm12, %v4070_v54, 1.0  ;;  %v4182_v6 = vsel %vm767_vm2, 1.0, %v5159_v25 }
 0x187   : > { %1135 = vperm.xlu2 %2673, %v2935_v20   ;;  %980 = vperm.xlu1 %2672, %v2939_v53   ;;  %v4189_v22 = vpop.f32.mrf.mxu2  ;;  %v4191_v53 = vpop.f32.mrf.mxu3  ;;  %2944 = vrcp.f32 %v799_v24 }
 0x188   : > { %v1021_v9 = vpop.permute.xlu0 %1020  ;;  %5227 = vst [vmem:[#allocation109_spill] sm:$0xff] %v4191_v53  ;;  %vm768_vm13 = vcmp.ne.f32.partialorder %v4189_v22, 0.0  ;;  %vm784_vm6 = vcmp.ne.f32.partialorder %v4191_v53, 0.0 }
 0x189   : > { %v1254_v36 = vmul.f32 %v1021_v9, %v3436_v62  ;;  %v1101_v29 = vpop.permute.xlu1 %1100  ;;  %v1031_v31 = vpop.permute.xlu2 %1030  ;;  %v1271_v9 = vmul.f32 %v1106_v50, %v3546_v45  ;;  %v4205_v10 = vsel %vm768_vm13, 1.0, %v5159_v25  ;;  %v4210_v45 = vsel %vm784_vm6, 1.0, %v5159_v25 }
 0x18a   : > { %v1270_v20 = vmul.f32 %v1101_v29, %v3498_v4  ;;  %v4187_v4 = vsel %vm783_vm3, 1.0, %v5159_v25  ;;  %v846_v29 = vsel %vm782_vm9, %v4035_v27, 1.0  ;;  %v2941_v50 = vpop.eup %2940 }
 0x18b   : > { %v1322_v62 = vadd.f32 %v3880_v48, %v1254_v36  ;;  %v2943_v28 = vpop.eup %2942  ;;  %v1339_v13 = vadd.f32 %v3880_v48, %v1271_v9  ;;  %2946 = vrcp.f32 %v846_v29 }
 0x18c   : > { %v1338_v15 = vadd.f32 %v3880_v48, %v1270_v20 }
 0x18d   : > { %v4197_v36 = vsel %vm1642_vm4, %v1322_v62, 0.0  ;;  %v2945_v24 = vpop.eup %2944 }
 0x18e   : > { %5228 = vst [vmem:[#allocation110_spill] sm:$0xff] %v4197_v36  ;;  %v4214_v20 = vsel %vm1658_vm10, %v1338_v15, 0.0  ;;  %1517 = vperm.xlu0 %2674, %v1394_v12   ;;  %vm1643_vm10 = vcmp.eq.s32.totalorder %v4022_v34, 1  ;;  %v1379_v34 = vsel %vm735_vm12, 1, %v5158_v40 }
 0x18f   : > { %5229 = vst [vmem:[#allocation111_spill] sm:$0xff] %v4214_v20  ;;  %1060 = vperm.xlu2 %2673, %v2941_v50   ;;  %1520 = vperm.xlu1 %2672, %v1395_v14  }
 0x190   : > { %v1545_v25 = vpop.permute.xlu0 %1544 }
 0x191   : > { %vm1659_vm4 = vcmp.eq.s32.totalorder %v1545_v25, 1  ;;  %v1026_v42 = vpop.permute.xlu1 %1025  ;;  %v956_v58 = vpop.permute.xlu2 %955 }
 0x192   : > { %v4221_v15 = vsel %vm1659_vm4, %v1339_v13, 0.0  ;;  %v1255_v12 = vmul.f32 %v1026_v42, %v3577_v41  ;;  %v2947_v36 = vpop.eup %2946  ;;  %v831_v41 = vsel %vm767_vm2, %v4150_v43, 1.0  ;;  %vm1627_vm4 = vcmp.eq.s32.totalorder %v4145_v59, 1 }
 0x193   : > { %5230 = vst [vmem:[#allocation112_spill] sm:$0xff] %v4221_v15  ;;  %2948 = vrcp.f32 %v831_v41  ;;  %v1396_v59 = vsel %vm752_vm7, 1, %v5158_v40 }
 0x194   : > { %v1323_v62 = vadd.f32 %v3880_v48, %v1255_v12 }
 0x196   : > { %v4226_v20 = vsel %vm1643_vm10, %v1323_v62, 0.0  ;;  %1215 = vperm.xlu0 %2674, %v2943_v28   ;;  %v847_v28 = vsel %vm783_vm3, %v4152_v52, 1.0  ;;  %vm1628_vm10 = vcmp.eq.s32.totalorder %v4098_v47, 1 }
 0x197   : > { %5231 = vst [vmem:[#allocation113_spill] sm:$0xff] %v4226_v20  ;;  %1220 = vperm.xlu1 %2672, %v2947_v36   ;;  %985 = vperm.xlu2 %2673, %v2945_v24   ;;  %2950 = vrcp.f32 %v847_v28 }
 0x198   : > { %v946_v14 = vpop.permute.xlu0 %945 }
 0x199   : > { %v1239_v9 = vmul.f32 %v946_v14, %v3550_v21  ;;  %v951_v29 = vpop.permute.xlu1 %950  ;;  %v4229_v50 = vpop.permute.xlu2 %1505  ;;  %v1256_v21 = vmul.f32 %v1031_v31, %v3613_v37  ;;  %v1380_v37 = vsel %vm736_vm8, 1, %v5158_v40 }
 0x19a   : > { %v1240_v13 = vmul.f32 %v951_v29, %v3581_v0  ;;  %v830_v0 = vsel %vm766_vm0, %v4076_v18, 1.0 }
 0x19b   : > { %v1307_v42 = vadd.f32 %v3880_v48, %v1239_v9  ;;  %2952 = vrcp.f32 %v830_v0  ;;  %v1324_v47 = vadd.f32 %v3880_v48, %v1256_v21  ;;  %v2949_v9 = vpop.eup %2948  ;;  %v1241_v0 = vmul.f32 %v956_v58, %v3674_v56 }
 0x19c   : > { %v1308_v36 = vadd.f32 %v3880_v48, %v1240_v13  ;;  %v815_v13 = vsel %vm751_vm5, %v4068_v61, 1.0  ;;  %vm5240_vm5 = vcmp.ne.f32.partialorder %v3296_v57, 0.0 }
 0x19d   : > { %v4249_v62 = vsel %vm1627_vm4, %v1307_v42, 0.0  ;;  %v2951_v29 = vpop.eup %2950  ;;  %v816_v42 = vsel %vm752_vm7, %v4102_v63, 1.0  ;;  %2954 = vrcp.f32 %v815_v13  ;;  %v1309_v56 = vadd.f32 %v3880_v48, %v1241_v0 }
 0x19e   : > { %v4251_v25 = vsel %vm1628_vm10, %v1308_v36, 0.0  ;;  %1472 = vperm.xlu0 %2674, %v1379_v34   ;;  %2956 = vrcp.f32 %v816_v42  ;;  %v800_v36 = vsel %vm736_vm8, %v4104_v46, 1.0  ;;  %vm5244_vm10 = vcmp.ne.f32.partialorder %v3500_v7, 0.0 }
 0x19f   : > { %1523 = vperm.xlu2 %2673, %v1396_v59   ;;  %1475 = vperm.xlu1 %2672, %v1380_v37   ;;  %v832_v37 = vsel %vm768_vm13, %v4189_v22, 1.0  ;;  %2958 = vrcp.f32 %v800_v36  ;;  %v1404_v36 = vsel %vm760_vm15, 1, %v5158_v40  ;;  %vm1646_vm15 = vcmp.eq.s32.totalorder %v4229_v50, 1 }
 0x1a0   : > { %v1500_v31 = vpop.permute.xlu0 %1499  ;;  %2960 = vrcp.f32 %v832_v37 }
 0x1a1   : > { %vm1644_vm12 = vcmp.eq.s32.totalorder %v1500_v31, 1  ;;  %v1503_v12 = vpop.permute.xlu1 %1502  ;;  %v4260_v24 = vpop.permute.xlu2 %1195  ;;  %v1405_v31 = vsel %vm761_vm1, 1, %v5158_v40  ;;  %vm5235_vm1 = vcmp.ne.f32.partialorder %v3756_v3, 0.0 }
 0x1a2   : > { %v4262_v14 = vsel %vm1644_vm12, %v1324_v47, 0.0  ;;  %v2953_v41 = vpop.eup %2952  ;;  %vm1645_vm8 = vcmp.eq.s32.totalorder %v1503_v12, 1  ;;  %vm5245_vm12 = vcmp.ne.f32.partialorder %v3407_v33, 0.0 }
 0x1a3   : > { %5232 = vst [vmem:[#allocation114_spill] sm:$0xff] %v4262_v14  ;;  %v2955_v59 = vpop.eup %2954 }
 0x1a4   : > { %v2957_v47 = vpop.eup %2956 }
 0x1a5   : > { %v2959_v42 = vpop.eup %2958 }
 0x1a6   : > { %1140 = vperm.xlu0 %2674, %v2953_v41   ;;  %v848_v41 = vsel %vm784_vm6, %v4191_v53, 1.0 }
 0x1a7   : > { %1225 = vperm.xlu2 %2673, %v2951_v29   ;;  %1145 = vperm.xlu1 %2672, %v2949_v9   ;;  %2962 = vrcp.f32 %v848_v41 }
 0x1a8   : > { %v4270_v28 = vpop.permute.xlu0 %1185 }
 0x1a9   : > { %v4272_v34 = vpop.permute.xlu1 %1190  ;;  %v4274_v21 = vpop.permute.xlu2 %1460 }
 0x1ae   : > { %1065 = vperm.xlu0 %2674, %v2955_v59   ;;  %v2961_v59 = vpop.eup %2960 }
 0x1af   : > { %1550 = vperm.xlu2 %2673, %v1405_v31   ;;  %1070 = vperm.xlu1 %2672, %v2957_v47   ;;  %v2963_v31 = vpop.eup %2962 }
 0x1b0   : > { %v1455_v58 = vpop.permute.xlu0 %1454 }
 0x1b1   : > { %vm1629_vm7 = vcmp.eq.s32.totalorder %v1455_v58, 1  ;;  %v1458_v9 = vpop.permute.xlu1 %1457  ;;  %v4287_v29 = vpop.permute.xlu2 %1120  ;;  %v1407_v58 = vsel %vm763_vm14, 1, %v5158_v40 }
 0x1b2   : > { %v4289_v13 = vsel %vm1629_vm7, %v1309_v56, 0.0  ;;  %v1408_v56 = vsel %vm764_vm11, 1, %v5158_v40  ;;  %vm1630_vm14 = vcmp.eq.s32.totalorder %v1458_v9, 1  ;;  %vm1631_vm11 = vcmp.eq.s32.totalorder %v4274_v21, 1 }
 0x1b3   : > { %5233 = vst [vmem:[#allocation115_spill] sm:$0xff] %v4289_v13  ;;  %vm5247_vm7 = vcmp.ne.f32.partialorder %v3648_v30, 0.0 }
 0x1b6   : > { %990 = vperm.xlu0 %2674, %v2959_v42  }
 0x1b7   : > { %1150 = vperm.xlu2 %2673, %v2961_v59   ;;  %1547 = vperm.xlu1 %2672, %v1404_v36  }
 0x1b8   : > { %v4297_v0 = vpop.permute.xlu0 %1110 }
 0x1b9   : > { %v4299_v37 = vpop.permute.xlu1 %1115  ;;  %v1046_v47 = vpop.permute.xlu2 %1045 }
 0x1be   : > { %1230 = vperm.xlu0 %2674, %v2963_v31  }
 0x1bf   : > { %1559 = vperm.xlu2 %2673, %v1408_v56   ;;  %1556 = vperm.xlu1 %2672, %v1407_v58   ;;  %v1406_v56 = vsel %vm5235_vm1, 1, %v5158_v40  ;;  %vm5250_vm1 = vcmp.ne.f32.partialorder %v3528_v8, 0.0 }
 0x1c0   : > { %v1036_v41 = vpop.permute.xlu0 %1035 }
 0x1c1   : > { %v1257_v42 = vmul.f32 %v1036_v41, %v3672_v26  ;;  %v1041_v59 = vpop.permute.xlu1 %1040  ;;  %v971_v36 = vpop.permute.xlu2 %970  ;;  %v1411_v26 = vsel %vm767_vm2, 1, %v5158_v40  ;;  %vm5241_vm2 = vcmp.ne.f32.partialorder %v3242_v38, 0.0 }
 0x1c2   : > { %v1258_v15 = vmul.f32 %v1041_v59, %v3683_v55  ;;  %v1410_v55 = vsel %vm766_vm0, 1, %v5158_v40  ;;  %v1259_v59 = vmul.f32 %v1046_v47, %v3786_v1  ;;  %vm5238_vm0 = vcmp.ne.f32.partialorder %v4033_v2, 0.0 }
 0x1c3   : > { %v1325_v14 = vadd.f32 %v3880_v48, %v1257_v42  ;;  %v1413_v1 = vsel %vm5241_vm2, 1, %v5158_v40 }
 0x1c4   : > { %v1326_v31 = vadd.f32 %v3880_v48, %v1258_v15  ;;  %v1327_v21 = vadd.f32 %v3880_v48, %v1259_v59 }
 0x1c5   : > { %v4312_v20 = vsel %vm1645_vm8, %v1325_v14, 0.0  ;;  %vm5248_vm8 = vcmp.ne.f32.partialorder %v3616_v32, 0.0 }
 0x1c6   : > { %5234 = vst [vmem:[#allocation116_spill] sm:$0xff] %v4312_v20  ;;  %v4317_v58 = vsel %vm1646_vm15, %v1326_v31, 0.0  ;;  %1553 = vperm.xlu0 %2674, %v1406_v56  }
 0x1c7   : > { %5236 = vst [vmem:[#allocation117_spill] sm:$0xff] %v4317_v58  ;;  %1568 = vperm.xlu2 %2673, %v1411_v26   ;;  %1565 = vperm.xlu1 %2672, %v1410_v55  }
 0x1c8   : > { %v961_v15 = vpop.permute.xlu0 %960 }
 0x1c9   : > { %v1242_v50 = vmul.f32 %v961_v15, %v3685_v19  ;;  %v966_v12 = vpop.permute.xlu1 %965  ;;  %v4326_v14 = vpop.permute.xlu2 %1514  ;;  %v1409_v19 = vsel %vm5238_vm0, 1, %v5158_v40 }
 0x1ca   : > { %v1243_v41 = vmul.f32 %v966_v12, %v3789_v5  ;;  %v1414_v5 = vsel %vm5240_vm5, 1, %v5158_v40  ;;  %v1417_v12 = vsel %vm5244_vm10, 1, %v5158_v40  ;;  %vm5255_vm5 = vcmp.ne.f32.partialorder %v3998_v23, 0.0 }
 0x1cb   : > { %v1310_v42 = vadd.f32 %v3880_v48, %v1242_v50  ;;  %v1412_v50 = vsel %vm768_vm13, 1, %v5158_v40  ;;  %vm5246_vm13 = vcmp.ne.f32.partialorder %v3363_v16, 0.0  ;;  %v1425_v38 = vsel %vm5255_vm5, 1, %v5158_v40 }
 0x1cc   : > { %v1311_v31 = vadd.f32 %v3880_v48, %v1243_v41  ;;  %v1416_v41 = vsel %vm5245_vm12, 1, %v5158_v40 }
 0x1cd   : > { %v4333_v56 = vsel %vm1630_vm14, %v1310_v42, 0.0  ;;  %vm5251_vm14 = vcmp.ne.f32.partialorder %v3866_v51, 0.0 }
 0x1ce   : > { %5237 = vst [vmem:[#allocation118_spill] sm:$0xff] %v4333_v56  ;;  %v4338_v26 = vsel %vm1631_vm11, %v1311_v31, 0.0  ;;  %1562 = vperm.xlu0 %2674, %v1409_v19   ;;  %v1244_v19 = vmul.f32 %v971_v36, %v3824_v11  ;;  %vm5252_vm11 = vcmp.ne.f32.partialorder %v3791_v49, 0.0 }
 0x1cf   : > { %5239 = vst [vmem:[#allocation119_spill] sm:$0xff] %v4338_v26  ;;  %1577 = vperm.xlu2 %2673, %v1414_v5   ;;  %1574 = vperm.xlu1 %2672, %v1413_v1   ;;  %v1415_v5 = vsel %vm5246_vm13, 1, %v5158_v40  ;;  %v1420_v1 = vsel %vm5247_vm7, 1, %v5158_v40 }
 0x1d0   : > { %v1509_v9 = vpop.permute.xlu0 %1508 }
 0x1d1   : > { %vm1647_vm4 = vcmp.eq.s32.totalorder %v1509_v9, 1  ;;  %v1512_v47 = vpop.permute.xlu1 %1511  ;;  %v4347_v55 = vpop.permute.xlu2 %1210  ;;  %v1312_v9 = vadd.f32 %v3880_v48, %v1244_v19  ;;  %v1422_v19 = vsel %vm5252_vm11, 1, %v5158_v40 }
 0x1d2   : > { %5242 = vst [vmem:[#allocation120_spill] sm:$0xff] %v4347_v55  ;;  %v4349_v15 = vsel %vm1647_vm4, %v1327_v21, 0.0  ;;  %v1419_v21 = vsel %vm5248_vm8, 1, %v5158_v40  ;;  %vm1648_vm2 = vcmp.eq.s32.totalorder %v1512_v47, 1  ;;  %v5258_v55 = vld [vmem:[#allocation75_spill] sm:$0xff] }
 0x1d3   : > { %5243 = vst [vmem:[#allocation121_spill] sm:$0xff] %v4349_v15  ;;  %vm5259_vm4 = vcmp.ne.f32.partialorder %v5258_v55, 0.0 }
 0x1d6   : > { %1571 = vperm.xlu0 %2674, %v1412_v50  }
 0x1d7   : > { %1586 = vperm.xlu2 %2673, %v1417_v12   ;;  %1583 = vperm.xlu1 %2672, %v1416_v41   ;;  %v1418_v41 = vsel %vm5250_vm1, 1, %v5158_v40 }
 0x1d8   : > { %v4360_v42 = vpop.permute.xlu0 %1200 }
 0x1d9   : > { %v4362_v59 = vpop.permute.xlu1 %1205  ;;  %v1470_v31 = vpop.permute.xlu2 %1469 }
 0x1de   : > { %1580 = vperm.xlu0 %2674, %v1415_v5   ;;  %v1423_v5 = vsel %vm5251_vm14, 1, %v5158_v40 }
 0x1df   : > { %1595 = vperm.xlu2 %2673, %v1420_v1   ;;  %1592 = vperm.xlu1 %2672, %v1419_v21  }
 0x1e0   : > { %v1464_v50 = vpop.permute.xlu0 %1463 }
 0x1e1   : > { %vm1632_vm15 = vcmp.eq.s32.totalorder %v1464_v50, 1  ;;  %v1467_v11 = vpop.permute.xlu1 %1466  ;;  %v4375_v36 = vpop.permute.xlu2 %1135  ;;  %v5253_v50 = vld [vmem:[#allocation58_spill] sm:$0xff] }
 0x1e2   : > { %v4377_v12 = vsel %vm1632_vm15, %v1312_v9, 0.0  ;;  %vm5254_vm0 = vcmp.ne.f32.partialorder %v5253_v50, 0.0  ;;  %vm1633_vm10 = vcmp.eq.s32.totalorder %v1467_v11, 1  ;;  %v5271_v11 = vld [vmem:[#allocation31_spill] sm:$0xff] }
 0x1e3   : > { %5249 = vst [vmem:[#allocation122_spill] sm:$0xff] %v4377_v12  ;;  %v1421_v15 = vsel %vm5254_vm0, 1, %v5158_v40  ;;  %v5256_v12 = vld [vmem:[#allocation84_spill] sm:$0xff] }
 0x1e6   : > { %1589 = vperm.xlu0 %2674, %v1418_v41   ;;  %v1426_v41 = vsel %vm782_vm9, 1, %v5158_v40  ;;  %vm1649_vm9 = vcmp.eq.s32.totalorder %v4326_v14, 1  ;;  %v5264_v14 = vld [vmem:[#allocation81_spill] sm:$0xff] }
 0x1e7   : > { %1604 = vperm.xlu2 %2673, %v1423_v5   ;;  %1601 = vperm.xlu1 %2672, %v1422_v19  }
 0x1e8   : > { %v4388_v1 = vpop.permute.xlu0 %1125 }
 0x1e9   : > { %v4390_v21 = vpop.permute.xlu1 %1130  ;;  %v1061_v9 = vpop.permute.xlu2 %1060 }
 0x1ee   : > { %1598 = vperm.xlu0 %2674, %v1421_v15  }
 0x1ef   : > { %1613 = vperm.xlu2 %2673, %v1426_v41   ;;  %1610 = vperm.xlu1 %2672, %v1425_v38   ;;  %v1424_v38 = vsel %vm5259_vm4, 1, %v5158_v40 }
 0x1f0   : > { %v1051_v5 = vpop.permute.xlu0 %1050 }
 0x1f1   : > { %v1260_v19 = vmul.f32 %v1051_v5, %v3815_v44  ;;  %v1056_v13 = vpop.permute.xlu1 %1055  ;;  %v986_v56 = vpop.permute.xlu2 %985  ;;  %v1428_v44 = vsel %vm784_vm6, 1, %v5158_v40  ;;  %vm1634_vm6 = vcmp.eq.s32.totalorder %v1470_v31, 1 }
 0x1f2   : > { %v1261_v26 = vmul.f32 %v1056_v13, %v5256_v12  ;;  %v5261_v13 = vld [vmem:[#allocation13_spill] sm:$0xff]  ;;  %v5262_v12 = vld [vmem:[#allocation11_spill] sm:$0xff] }
 0x1f3   : > { %v1328_v20 = vadd.f32 %v3880_v48, %v1260_v19  ;;  %v5263_v47 = vpack.i.bf16 %v5261_v13, %v5262_v12  ;;  %v5267_v12 = vld [vmem:[#allocation40_spill] sm:$0xff] }
 0x1f4   : > { %v1329_v15 = vadd.f32 %v3880_v48, %v1261_v26 }
 0x1f5   : > { %v4406_v58 = vsel %vm1648_vm2, %v1328_v20, 0.0 }
 0x1f6   : > { %5257 = vst [vmem:[#allocation58_spill] sm:$0xff] %v4406_v58  ;;  %v4411_v41 = vsel %vm1649_vm9, %v1329_v15, 0.0  ;;  %1607 = vperm.xlu0 %2674, %v1424_v38   ;;  %v5265_v58 = vld [vmem:[#allocation85_spill] sm:$0xff]  ;;  %v5266_v38 = vld [vmem:[#allocation90_spill] sm:$0xff] }
 0x1f7   : > { %5260 = vst [vmem:[#allocation84_spill] sm:$0xff] %v4411_v41  ;;  %2676 = vperm.xlu2 %2673, %v5263_v47   ;;  %1619 = vperm.xlu1 %2672, %v1428_v44   ;;  %v1262_v41 = vmul.f32 %v1061_v9, %v5266_v38  ;;  %v1427_v44 = vsel %vm783_vm3, 1, %v5158_v40  ;;  %v5268_v47 = vld [vmem:[#allocation39_spill] sm:$0xff]  ;;  %v1273_v40 = vmul.f32 %v4299_v37, %v3736_v39 }
 0x1f8   : > { %v976_v26 = vpop.permute.xlu0 %975  ;;  %v1247_v37 = vmul.f32 %v986_v56, %v4070_v54  ;;  %v1276_v56 = vmul.f32 %v4390_v21, %v3908_v60  ;;  %v5304_v21 = vld [vmem:[#allocation30_spill] sm:$0xff] }
 0x1f9   : > { %v1245_v20 = vmul.f32 %v976_v26, %v5264_v14  ;;  %v981_v5 = vpop.permute.xlu1 %980  ;;  %v4420_v19 = vpop.permute.xlu2 %1523  ;;  %v5270_v26 = vld [vmem:[#allocation32_spill] sm:$0xff] }
 0x1fa   : > { %v1246_v55 = vmul.f32 %v981_v5, %v5265_v58  ;;  %v5269_v58 = vpack.i.bf16 %v5267_v12, %v5268_v47  ;;  %v5272_v14 = vpack.i.bf16 %v5270_v26, %v5271_v11  ;;  %v5278_v12 = vld [vmem:[#allocation87_spill] sm:$0xff]  ;;  %vm1652_vm1 = vcmp.eq.s32.totalorder %v4420_v19, 1 }
 0x1fb   : > { %v1313_v15 = vadd.f32 %v3880_v48, %v1245_v20 }
 0x1fc   : > { %v1314_v53 = vadd.f32 %v3880_v48, %v1246_v55  ;;  %v1330_v55 = vadd.f32 %v3880_v48, %v1262_v41  ;;  %v5281_v41 = vld [vmem:[#allocation70_spill] sm:$0xff] }
 0x1fd   : > { %v4426_v23 = vsel %vm1633_vm10, %v1313_v15, 0.0  ;;  %v5275_v15 = vld [vmem:[#allocation21_spill] sm:$0xff] }
 0x1fe   : > { %v4431_v13 = vsel %vm1634_vm6, %v1314_v53, 0.0  ;;  %1616 = vperm.xlu0 %2674, %v1427_v44   ;;  %v5274_v53 = vld [vmem:[#allocation24_spill] sm:$0xff] }
 0x1ff   : > { %2691 = vperm.xlu2 %2673, %v5269_v58   ;;  %2686 = vperm.xlu1 %2672, %v5272_v14   ;;  %v5276_v38 = vpack.i.bf16 %v5274_v53, %v5275_v15  ;;  %v5277_v44 = vld [vmem:[#allocation88_spill] sm:$0xff]  ;;  %v5280_v58 = vld [vmem:[#allocation71_spill] sm:$0xff]  ;;  %v1341_v14 = vadd.f32 %v3880_v48, %v1273_v40  ;;  %v5285_v15 = vld [vmem:[#allocation50_spill] sm:$0xff]  ;;  %v1315_v40 = vadd.f32 %v3880_v48, %v1247_v37 }
 0x200   : > { %v1518_v31 = vpop.permute.xlu0 %1517  ;;  %v5279_v47 = vpack.i.bf16 %v5277_v44, %v5278_v12  ;;  %v5282_v26 = vpack.i.bf16 %v5280_v58, %v5281_v41  ;;  %v5284_v53 = vld [vmem:[#allocation52_spill] sm:$0xff]  ;;  %v5287_v44 = vld [vmem:[#allocation23_spill] sm:$0xff]  ;;  %v5288_v12 = vld [vmem:[#allocation22_spill] sm:$0xff] }
 0x201   : > { %vm1650_vm12 = vcmp.eq.s32.totalorder %v1518_v31, 1  ;;  %v1521_v9 = vpop.permute.xlu1 %1520  ;;  %v4440_v20 = vpop.permute.xlu2 %1225  ;;  %v5290_v58 = vld [vmem:[#allocation14_spill] sm:$0xff]  ;;  %v5291_v41 = vld [vmem:[#allocation12_spill] sm:$0xff] }
 0x202   : > { %v4442_v5 = vsel %vm1650_vm12, %v1330_v55, 0.0  ;;  %v5301_v37 = vld [vmem:[#allocation42_spill] sm:$0xff]  ;;  %vm1651_vm15 = vcmp.eq.s32.totalorder %v1521_v9, 1  ;;  %v5318_v9 = vld [vmem:[#allocation33_spill] sm:$0xff] }
 0x203   : > { %5273 = vst [vmem:[#allocation13_spill] sm:$0xff] %v4442_v5 }
 0x206   : > { %2681 = vperm.xlu0 %2674, %v5276_v38   ;;  %v5286_v38 = vpack.i.bf16 %v5284_v53, %v5285_v15  ;;  %v5294_v53 = vld [vmem:[#allocation104_spill] sm:$0xff]  ;;  %v5295_v15 = vld [vmem:[#allocation106_spill] sm:$0xff] }
 0x207   : > { %2706 = vperm.xlu2 %2673, %v5279_v47   ;;  %2701 = vperm.xlu1 %2672, %v5282_v26   ;;  %v5289_v47 = vpack.i.bf16 %v5287_v44, %v5288_v12  ;;  %v5292_v26 = vpack.i.bf16 %v5290_v58, %v5291_v41  ;;  %v5297_v44 = vld [vmem:[#allocation54_spill] sm:$0xff]  ;;  %v5298_v12 = vld [vmem:[#allocation53_spill] sm:$0xff]  ;;  %v5300_v58 = vld [vmem:[#allocation43_spill] sm:$0xff] }
 0x208   : > { %v4455_v11 = vpop.permute.xlu0 %1215  ;;  %v5302_v41 = vpack.i.bf16 %v5300_v58, %v5301_v37  ;;  %v5311_v58 = vld [vmem:[#allocation93_spill] sm:$0xff] }
 0x209   : > { %v4458_v55 = vpop.permute.xlu1 %1220  ;;  %v1551_v31 = vpop.permute.xlu2 %1550 }
 0x20a   : > { %vm1661_vm3 = vcmp.eq.s32.totalorder %v1551_v31, 1 }
 0x20b   : > { %v4460_v39 = vsel %vm1661_vm3, %v1341_v14, 0.0 }
 0x20c   : > { %5283 = vst [vmem:[#allocation11_spill] sm:$0xff] %v4460_v39 }
 0x20e   : > { %2696 = vperm.xlu0 %2674, %v5286_v38   ;;  %v5296_v38 = vpack.i.bf16 %v5294_v53, %v5295_v15  ;;  %v5305_v53 = vld [vmem:[#allocation29_spill] sm:$0xff] }
 0x20f   : > { %2721 = vperm.xlu2 %2673, %v5289_v47   ;;  %2716 = vperm.xlu1 %2672, %v5292_v26   ;;  %v5299_v47 = vpack.i.bf16 %v5297_v44, %v5298_v12  ;;  %v1344_v26 = vadd.f32 %v3880_v48, %v1276_v56  ;;  %v5306_v15 = vpack.i.bf16 %v5304_v21, %v5305_v53  ;;  %v5308_v44 = vld [vmem:[#allocation107_spill] sm:$0xff] }
 0x210   : > { %v1473_v5 = vpop.permute.xlu0 %1472 }
 0x211   : > { %vm1635_vm13 = vcmp.eq.s32.totalorder %v1473_v5, 1  ;;  %v4473_v14 = vpop.permute.xlu2 %1150  ;;  %v1476_v31 = vpop.permute.xlu1 %1475 }
 0x212   : > { %v4475_v54 = vsel %vm1635_vm13, %v1315_v40, 0.0  ;;  %vm1636_vm0 = vcmp.eq.s32.totalorder %v1476_v31, 1 }
 0x213   : > { %5293 = vst [vmem:[#allocation81_spill] sm:$0xff] %v4475_v54 }
 0x216   : > { %2711 = vperm.xlu0 %2674, %v5296_v38   ;;  %v5307_v38 = vld [vmem:[#allocation105_spill] sm:$0xff] }
 0x217   : > { %2736 = vperm.xlu2 %2673, %v5299_v47   ;;  %2731 = vperm.xlu1 %2672, %v5302_v41   ;;  %v5309_v12 = vpack.i.bf16 %v5307_v38, %v5308_v44  ;;  %v5310_v47 = vld [vmem:[#allocation94_spill] sm:$0xff] }
 0x218   : > { %v1141_v5 = vpop.permute.xlu0 %1140  ;;  %v5312_v37 = vpack.i.bf16 %v5310_v47, %v5311_v58  ;;  %v5317_v47 = vld [vmem:[#allocation34_spill] sm:$0xff] }
 0x219   : > { %v1560_v40 = vpop.permute.xlu2 %1559  ;;  %v1146_v39 = vpop.permute.xlu1 %1145  ;;  %v5319_v58 = vpack.i.bf16 %v5317_v47, %v5318_v9  ;;  %v5327_v47 = vld [vmem:[#allocation78_spill] sm:$0xff]  ;;  %v5328_v9 = vld [vmem:[#allocation76_spill] sm:$0xff] }
 0x21a   : > { %vm1664_vm7 = vcmp.eq.s32.totalorder %v1560_v40, 1  ;;  %v1279_v60 = vmul.f32 %v1146_v39, %v4150_v43 }
 0x21b   : > { %v4489_v54 = vsel %vm1664_vm7, %v1344_v26, 0.0 }
 0x21c   : > { %5303 = vst [vmem:[#allocation85_spill] sm:$0xff] %v4489_v54  ;;  %v1347_v41 = vadd.f32 %v3880_v48, %v1279_v60  ;;  %v1272_v60 = vmul.f32 %v4297_v0, %v3567_v35 }
 0x21e   : > { %2726 = vperm.xlu0 %2674, %v5306_v15   ;;  %v5313_v15 = vld [vmem:[#allocation67_spill] sm:$0xff]  ;;  %v1340_v0 = vadd.f32 %v3880_v48, %v1272_v60 }
 0x21f   : > { %2751 = vperm.xlu2 %2673, %v5309_v12   ;;  %2746 = vperm.xlu1 %2672, %v5312_v37   ;;  %v1282_v38 = vmul.f32 %v5313_v15, %v3296_v57  ;;  %v5320_v37 = vld [vmem:[#allocation27_spill] sm:$0xff]  ;;  %v5323_v15 = vld [vmem:[#allocation102_spill] sm:$0xff] }
 0x220   : > { %v1066_v56 = vpop.permute.xlu0 %1065 }
 0x221   : > { %v1263_v26 = vmul.f32 %v1066_v56, %v4068_v61  ;;  %v1569_v40 = vpop.permute.xlu2 %1568  ;;  %v1071_v54 = vpop.permute.xlu1 %1070  ;;  %v5321_v56 = vld [vmem:[#allocation25_spill] sm:$0xff]  ;;  %v1350_v35 = vadd.f32 %v3880_v48, %v1282_v38  ;;  %v1275_v38 = vmul.f32 %v4388_v1, %v3868_v17 }
 0x222   : > { %vm1667_vm8 = vcmp.eq.s32.totalorder %v1569_v40, 1  ;;  %v1264_v43 = vmul.f32 %v1071_v54, %v4102_v63  ;;  %v5314_v63 = vld [vmem:[#allocation69_spill] sm:$0xff]  ;;  %v5315_v54 = vld [vmem:[#allocation68_spill] sm:$0xff]  ;;  %v5322_v57 = vpack.i.bf16 %v5320_v37, %v5321_v56  ;;  %v5331_v37 = vld [vmem:[#allocation59_spill] sm:$0xff] }
 0x223   : > { %v1331_v39 = vadd.f32 %v3880_v48, %v1263_v26  ;;  %v4505_v21 = vsel %vm1667_vm8, %v1347_v41, 0.0  ;;  %v5316_v12 = vpack.i.bf16 %v5314_v63, %v5315_v54  ;;  %v1285_v63 = vmul.f32 %v5323_v15, %v3500_v7  ;;  %v5325_v54 = vld [vmem:[#allocation19_spill] sm:$0xff]  ;;  %v4554_v17 = vld [vmem:[%s5019_s2] ss:$0 sm:$0xff] }
 0x224   : > { %v1332_v53 = vadd.f32 %v3880_v48, %v1264_v43  ;;  %v1343_v1 = vadd.f32 %v4554_v17, %v1275_v38  ;;  %v5334_v15 = vld [vmem:[#allocation37_spill] sm:$0xff]  ;;  %v5336_v38 = vld [vmem:[#allocation18_spill] sm:$0xff] }
 0x225   : > { %v4513_v61 = vsel %vm1651_vm15, %v1331_v39, 0.0  ;;  %v1353_v7 = vadd.f32 %v4554_v17, %v1285_v63 }
 0x226   : > { %v4515_v44 = vsel %vm1652_vm1, %v1332_v53, 0.0  ;;  %2741 = vperm.xlu0 %2674, %v5316_v12  }
 0x227   : > { %2766 = vperm.xlu2 %2673, %v5319_v58   ;;  %2761 = vperm.xlu1 %2672, %v5322_v57   ;;  %v5330_v58 = vld [vmem:[#allocation60_spill] sm:$0xff] }
 0x228   : > { %v991_v41 = vpop.permute.xlu0 %990  ;;  %v5332_v56 = vpack.i.bf16 %v5330_v58, %v5331_v37  ;;  %v5340_v58 = vld [vmem:[#allocation101_spill] sm:$0xff]  ;;  %v5341_v37 = vld [vmem:[#allocation100_spill] sm:$0xff] }
 0x229   : > { %v1248_v19 = vmul.f32 %v991_v41, %v4104_v46  ;;  %v1578_v26 = vpop.permute.xlu2 %1577  ;;  %v1548_v40 = vpop.permute.xlu1 %1547  ;;  %v5324_v46 = vld [vmem:[#allocation20_spill] sm:$0xff] }
 0x22a   : > { %vm1670_vm14 = vcmp.eq.s32.totalorder %v1578_v26, 1  ;;  %vm1660_vm11 = vcmp.eq.s32.totalorder %v1548_v40, 1  ;;  %v5326_v12 = vpack.i.bf16 %v5324_v46, %v5325_v54  ;;  %v1288_v26 = vmul.f32 %v4272_v34, %v3648_v30  ;;  %v5337_v46 = vld [vmem:[#allocation16_spill] sm:$0xff] }
 0x22b   : > { %v1316_v43 = vadd.f32 %v3880_v48, %v1248_v19  ;;  %v4530_v39 = vsel %vm1670_vm14, %v1350_v35, 0.0  ;;  %v4532_v53 = vsel %vm1660_vm11, %v1340_v0, 0.0  ;;  %v5329_v48 = vpack.i.bf16 %v5327_v47, %v5328_v9 }
 0x22c   : > { %v1274_v19 = vmul.f32 %v4287_v29, %v3756_v3  ;;  %v1278_v40 = vmul.f32 %v1141_v5, %v4076_v18  ;;  %v5338_v54 = vpack.i.bf16 %v5336_v38, %v5337_v46  ;;  %v1356_v29 = vadd.f32 %v4554_v17, %v1288_v26  ;;  %v5349_v38 = vld [vmem:[#allocation98_spill] sm:$0xff] }
 0x22d   : > { %v4538_v60 = vsel %vm1636_vm0, %v1316_v43, 0.0  ;;  %v5333_v43 = vld [vmem:[#allocation38_spill] sm:$0xff]  ;;  %v1284_v46 = vmul.f32 %v5349_v38, %v3407_v33 }
 0x22e   : > { %2756 = vperm.xlu0 %2674, %v5326_v12   ;;  %v5335_v63 = vpack.i.bf16 %v5333_v43, %v5334_v15  ;;  %v5339_v12 = vpack.i.bf16 %v4205_v10, %v4182_v6  ;;  %v1342_v47 = vadd.f32 %v4554_v17, %v1274_v19  ;;  %v1346_v30 = vadd.f32 %v4554_v17, %v1278_v40  ;;  %v5347_v19 = vld [vmem:[#allocation35_spill] sm:$0xff] }
 0x22f   : > { %2781 = vperm.xlu2 %2673, %v5329_v48   ;;  %2776 = vperm.xlu1 %2672, %v5332_v56   ;;  %v1277_v10 = vmul.f32 %v4375_v36, %v4033_v2  ;;  %v1291_v6 = vmul.f32 %v4362_v59, %v3866_v51  ;;  %v5342_v56 = vpack.i.bf16 %v5340_v58, %v5341_v37  ;;  %v1813_v37 = vlaneseq }
 0x230   : > { %v4549_v31 = vpop.permute.xlu0 %1230  ;;  %v1352_v33 = vadd.f32 %v4554_v17, %v1284_v46  ;;  %v5364_v46 = vld [vmem:[#allocation65_spill] sm:$0xff] }
 0x231   : > { %v1587_v57 = vpop.permute.xlu2 %1586  ;;  %v1557_v41 = vpop.permute.xlu1 %1556  ;;  %v1345_v40 = vadd.f32 %v4554_v17, %v1277_v10  ;;  %v1359_v2 = vadd.f32 %v4554_v17, %v1291_v6  ;;  %v5357_v10 = vld [vmem:[#allocation74_spill] sm:$0xff]  ;;  %v4639_v38 = vand.u32 127, %v1813_v37 }
 0x232   : > { %vm1673_vm5 = vcmp.eq.s32.totalorder %v1587_v57, 1  ;;  %vm1663_vm2 = vcmp.eq.s32.totalorder %v1557_v41, 1  ;;  %v5346_v41 = vld [vmem:[#allocation36_spill] sm:$0xff] }
 0x233   : > { %v4558_v35 = vsel %vm1673_vm5, %v1353_v7, 0.0  ;;  %v4560_v0 = vsel %vm1663_vm2, %v1343_v1, 0.0  ;;  %v5343_v7 = vld [vmem:[#allocation46_spill] sm:$0xff]  ;;  %v5344_v1 = vld [vmem:[#allocation45_spill] sm:$0xff]  ;;  %v5348_v26 = vpack.i.bf16 %v5346_v41, %v5347_v19  ;;  %v5362_v19 = vld [vmem:[#allocation72_spill] sm:$0xff]  ;;  %vm1815_vm14 = vcmp.eq.s32.totalorder %v4639_v38, 8 }
 0x234   : > { %v5345_v57 = vpack.i.bf16 %v5343_v7, %v5344_v1  ;;  %v5359_v7 = vld [vmem:[#allocation5_spill] sm:$0xff]  ;;  %v5360_v1 = vld [vmem:[#allocation56_spill] sm:$0xff] }
 0x235   : > { %v5361_v41 = vld [vmem:[#allocation9_spill] sm:$0xff] }
 0x236   : > { %2771 = vperm.xlu0 %2674, %v5335_v63   ;;  %v1280_v63 = vmul.f32 %v4473_v14, %v4189_v22 }
 0x237   : > { %2796 = vperm.xlu2 %2673, %v5338_v54   ;;  %2791 = vperm.xlu1 %2672, %v5339_v12   ;;  %v1294_v54 = vmul.f32 %v4458_v55, %v4035_v27  ;;  %v5350_v12 = vld [vmem:[#allocation28_spill] sm:$0xff] }
 0x238   : > { %v1554_v3 = vpop.permute.xlu0 %1553  ;;  %v1348_v22 = vadd.f32 %v4554_v17, %v1280_v63  ;;  %v1287_v63 = vmul.f32 %v4270_v28, %v3616_v32 }
 0x239   : > { %vm1662_vm9 = vcmp.eq.s32.totalorder %v1554_v3, 1  ;;  %v1596_v18 = vpop.permute.xlu2 %1595  ;;  %v1566_v34 = vpop.permute.xlu1 %1565  ;;  %v1362_v27 = vadd.f32 %v4554_v17, %v1294_v54  ;;  %v5365_v54 = vld [vmem:[#allocation64_spill] sm:$0xff] }
 0x23a   : > { %v4579_v5 = vsel %vm1662_vm9, %v1342_v47, 0.0  ;;  %vm1676_vm4 = vcmp.eq.s32.totalorder %v1596_v18, 1  ;;  %vm1666_vm10 = vcmp.eq.s32.totalorder %v1566_v34, 1  ;;  %v5351_v47 = vld [vmem:[#allocation26_spill] sm:$0xff]  ;;  %v5356_v34 = vld [vmem:[#allocation77_spill] sm:$0xff]  ;;  %v1355_v32 = vadd.f32 %v4554_v17, %v1287_v63 }
 0x23b   : > { %v4581_v9 = vsel %vm1676_vm4, %v1356_v29, 0.0  ;;  %v4583_v48 = vsel %vm1666_vm10, %v1346_v30, 0.0  ;;  %v5352_v3 = vpack.i.bf16 %v5350_v12, %v5351_v47  ;;  %v5353_v29 = vld [vmem:[#allocation97_spill] sm:$0xff]  ;;  %v5354_v30 = vld [vmem:[#allocation96_spill] sm:$0xff]  ;;  %v5358_v6 = vpack.i.bf16 %v5356_v34, %v5357_v10 }
 0x23c   : > { %v5355_v18 = vpack.i.bf16 %v5353_v29, %v5354_v30  ;;  %v5366_v12 = vpack.i.bf16 %v5364_v46, %v5365_v54  ;;  %v5367_v29 = vld [vmem:[#allocation44_spill] sm:$0xff]  ;;  %v5371_v54 = vld [vmem:[#allocation91_spill] sm:$0xff] }
 0x23d   : > { %vm1622_vm8 = vcmp.eq.s32.totalorder %v5367_v29, 1 }
 0x23e   : > { %2786 = vperm.xlu0 %2674, %v5342_v56  }
 0x23f   : > { %2811 = vperm.xlu2 %2673, %v5345_v57   ;;  %2806 = vperm.xlu1 %2672, %v5348_v26   ;;  %v1233_v57 = vmul.f32 %v5360_v1, %v5359_v7  ;;  %v1234_v26 = vmul.f32 %v5362_v19, %v5361_v41  ;;  %v1290_v1 = vmul.f32 %v4360_v42, %v3791_v49 }
 0x240   : > { %v1563_v43 = vpop.permute.xlu0 %1562 }
 0x241   : > { %vm1665_vm6 = vcmp.eq.s32.totalorder %v1563_v43, 1  ;;  %v1605_v36 = vpop.permute.xlu2 %1604  ;;  %v4600_v51 = vpop.permute.xlu1 %1574  ;;  %v1301_v47 = vadd.f32 %v4554_v17, %v1233_v57  ;;  %v5370_v57 = vpack.i.bf16 %v4210_v45, %v4187_v4  ;;  %v1358_v19 = vadd.f32 %v4554_v17, %v1290_v1  ;;  %v5377_v1 = vld [vmem:[#allocation62_spill] sm:$0xff] }
 0x242   : > { %v4602_v59 = vsel %vm1665_vm6, %v1345_v40, 0.0  ;;  %vm1679_vm12 = vcmp.eq.s32.totalorder %v1605_v36, 1  ;;  %v1289_v4 = vmul.f32 %v4260_v24, %v5253_v50  ;;  %vm1639_vm4 = vcmp.eq.s32.totalorder %v5377_v1, 1  ;;  %v5383_v1 = vld [vmem:[#allocation86_spill] sm:$0xff] }
 0x243   : > { %v4604_v15 = vsel %vm1679_vm12, %v1359_v2, 0.0  ;;  %v5363_v2 = vld [vmem:[#allocation63_spill] sm:$0xff] }
 0x244   : > { %v1283_v36 = vmul.f32 %v5363_v2, %v3363_v16 }
 0x246   : > { %2801 = vperm.xlu0 %2674, %v5352_v3   ;;  %v1302_v3 = vadd.f32 %v4554_v17, %v1234_v26  ;;  %v1351_v16 = vadd.f32 %v4554_v17, %v1283_v36 }
 0x247   : > { %2826 = vperm.xlu2 %2673, %v5355_v18   ;;  %2821 = vperm.xlu1 %2672, %v5358_v6   ;;  %v5368_v18 = vld [vmem:[#allocation48_spill] sm:$0xff] }
 0x248   : > { %v1572_v14 = vpop.permute.xlu0 %1571  ;;  %vm1621_vm15 = vcmp.eq.s32.totalorder %v5368_v18, 1  ;;  %v5373_v18 = vld [vmem:[#allocation83_spill] sm:$0xff] }
 0x249   : > { %vm1668_vm3 = vcmp.eq.s32.totalorder %v1572_v14, 1  ;;  %v1614_v55 = vpop.permute.xlu2 %1613  ;;  %v1584_v58 = vpop.permute.xlu1 %1583  ;;  %v1685_v14 = vsel %vm1621_vm15, %v1301_v47, 0.0  ;;  %v1357_v47 = vadd.f32 %v4554_v17, %v1289_v4 }
 0x24a   : > { %v4624_v56 = vsel %vm1668_vm3, %v1348_v22, 0.0  ;;  %vm1682_vm13 = vcmp.eq.s32.totalorder %v1614_v55, 1  ;;  %vm1672_vm7 = vcmp.eq.s32.totalorder %v1584_v58, 1  ;;  %v5369_v55 = vld [vmem:[#allocation99_spill] sm:$0xff] }
 0x24b   : > { %v4630_v40 = vsel %vm1682_vm13, %v1362_v27, 0.0  ;;  %v4632_v43 = vsel %vm1672_vm7, %v1352_v33, 0.0  ;;  %v1686_v33 = vsel %vm1622_vm8, %v1302_v3, 0.0  ;;  %v1286_v58 = vmul.f32 %v5369_v55, %v3528_v8 }
 0x24c   : > { %vm1669_vm7 = vcmp.eq.s32.totalorder %v4600_v51, 1 }
 0x24d   : > { %v1354_v8 = vadd.f32 %v4554_v17, %v1286_v58 }
 0x24e   : > { %2816 = vperm.xlu0 %2674, %v5366_v12   ;;  %v1293_v12 = vmul.f32 %v4455_v11, %v5371_v54 }
 0x250   : > { %v1581_v30 = vpop.permute.xlu0 %1580  ;;  %v1361_v24 = vadd.f32 %v4554_v17, %v1293_v12 }
 0x251   : > { %vm1671_vm1 = vcmp.eq.s32.totalorder %v1581_v30, 1  ;;  %v2677_v28 = vpop.permute.xlu2 %2676  ;;  %v1593_v34 = vpop.permute.xlu1 %1592 }
 0x252   : > { %v4653_v10 = vsel %vm1671_vm1, %v1351_v16, 0.0  ;;  %v2679_v6 = vunpack.i.h.bf16 %v2677_v28  ;;  %v2678_v22 = vunpack.i.l.bf16 %v2677_v28  ;;  %vm1675_vm11 = vcmp.eq.s32.totalorder %v1593_v34, 1  ;;  %v5374_v28 = vld [vmem:[#allocation75_spill] sm:$0xff]  ;;  %v5375_v34 = vld [vmem:[#allocation120_spill] sm:$0xff] }
 0x253   : > { %v4655_v27 = vsel %vm1675_vm11, %v1355_v32, 0.0 }
 0x254   : > { %v2137_v37 = vsel %vm1815_vm14, %v2679_v6, %v1686_v33  ;;  %v2136_v7 = vsel %vm1815_vm14, %v2678_v22, %v1685_v14  ;;  %v1292_v6 = vmul.f32 %v5375_v34, %v5374_v28  ;;  %v5376_v33 = vld [vmem:[#allocation109_spill] sm:$0xff] }
 0x255   : > { %2200 = vst [vmem:[%s4665_s21] sm:$0xff] %v2136_v7  ;;  %v1296_v55 = vmul.f32 %v4549_v31, %v5376_v33 }
 0x256   : > { %2201 = vst [vmem:[%s4665_s21 + $0x8] sm:$0xff] %v2137_v37  ;;  %2831 = vperm.xlu0 %2674, %v5370_v57   ;;  %v1360_v37 = vadd.f32 %v4554_v17, %v1292_v6 }
 0x258   : > { %v1590_v41 = vpop.permute.xlu0 %1589 }
 0x259   : > { %vm1674_vm0 = vcmp.eq.s32.totalorder %v1590_v41, 1  ;;  %v2692_v26 = vpop.permute.xlu2 %2691  ;;  %v1602_v49 = vpop.permute.xlu1 %1601 }
 0x25a   : > { %v4674_v42 = vsel %vm1674_vm0, %v1354_v8, 0.0  ;;  %v2694_v2 = vunpack.i.h.bf16 %v2692_v26  ;;  %v2693_v36 = vunpack.i.l.bf16 %v2692_v26  ;;  %vm1678_vm5 = vcmp.eq.s32.totalorder %v1602_v49, 1 }
 0x25b   : > { %v4676_v63 = vsel %vm1678_vm5, %v1358_v19, 0.0  ;;  %v1295_v49 = vmul.f32 %v4440_v20, %v4152_v52 }
 0x25c   : > { %v2143_v45 = vsel %vm1815_vm14, %v2694_v2, %v4251_v25  ;;  %v2142_v46 = vsel %vm1815_vm14, %v2693_v36, %v4249_v62  ;;  %v5372_v62 = vld [vmem:[#allocation17_spill] sm:$0xff]  ;;  %v5378_v2 = vld [vmem:[#allocation92_spill] sm:$0xff] }
 0x25d   : > { %2206 = vst [vmem:[%s4665_s21 + $0x30] sm:$0xff] %v2142_v46  ;;  %v1251_v11 = vmul.f32 %v5373_v18, %v5372_v62  ;;  %v5381_v62 = vld [vmem:[#allocation103_spill] sm:$0xff] }
 0x25e   : > { %2207 = vst [vmem:[%s4665_s21 + $0x38] sm:$0xff] %v2143_v45  ;;  %v1363_v45 = vadd.f32 %v4554_v17, %v1295_v49 }
 0x25f   : > { %v1319_v58 = vadd.f32 %v4554_v17, %v1251_v11  ;;  %v5382_v11 = vld [vmem:[#allocation79_spill] sm:$0xff] }
 0x260   : > { %v1599_v3 = vpop.permute.xlu0 %1598 }
 0x261   : > { %vm1677_vm2 = vcmp.eq.s32.totalorder %v1599_v3, 1  ;;  %v2707_v50 = vpop.permute.xlu2 %2706  ;;  %v1611_v29 = vpop.permute.xlu1 %1610  ;;  %v1703_v19 = vsel %vm1639_vm4, %v1319_v58, 0.0 }
 0x262   : > { %v4692_v25 = vsel %vm1677_vm2, %v1357_v47, 0.0  ;;  %v2709_v16 = vunpack.i.h.bf16 %v2707_v50  ;;  %v2708_v30 = vunpack.i.l.bf16 %v2707_v50  ;;  %vm1681_vm9 = vcmp.eq.s32.totalorder %v1611_v29, 1  ;;  %v5379_v50 = vld [vmem:[#allocation117_spill] sm:$0xff] }
 0x263   : > { %v4696_v32 = vsel %vm1681_vm9, %v1361_v24, 0.0 }
 0x264   : > { %v2149_v22 = vsel %vm1815_vm14, %v2709_v16, %v4431_v13  ;;  %v2148_v14 = vsel %vm1815_vm14, %v2708_v30, %v4426_v23  ;;  %v1364_v13 = vadd.f32 %v4554_v17, %v1296_v55  ;;  %v5380_v16 = vld [vmem:[#allocation116_spill] sm:$0xff] }
 0x265   : > { %2212 = vst [vmem:[%s4665_s21 + $0x60] sm:$0xff] %v2148_v14 }
 0x266   : > { %2213 = vst [vmem:[%s4665_s21 + $0x68] sm:$0xff] %v2149_v22 }
 0x268   : > { %v1608_v7 = vpop.permute.xlu0 %1607 }
 0x269   : > { %vm1680_vm10 = vcmp.eq.s32.totalorder %v1608_v7, 1  ;;  %v2722_v57 = vpop.permute.xlu2 %2721  ;;  %v1620_v8 = vpop.permute.xlu1 %1619 }
 0x26a   : > { %v4714_v23 = vsel %vm1680_vm10, %v1360_v37, 0.0  ;;  %v2724_v41 = vunpack.i.h.bf16 %v2722_v57  ;;  %v2723_v31 = vunpack.i.l.bf16 %v2722_v57  ;;  %vm1684_vm6 = vcmp.eq.s32.totalorder %v1620_v8, 1  ;;  %v5384_v57 = vld [vmem:[#allocation73_spill] sm:$0xff] }
 0x26b   : > { %v4716_v26 = vsel %vm1684_vm6, %v1364_v13, 0.0 }
 0x26c   : > { %v2155_v36 = vsel %vm1815_vm14, %v2724_v41, %v5378_v2  ;;  %v2154_v4 = vsel %vm1815_vm14, %v2723_v31, %v1703_v19  ;;  %v5385_v41 = vld [vmem:[#allocation6_spill] sm:$0xff]  ;;  %v5386_v31 = vld [vmem:[#allocation55_spill] sm:$0xff] }
 0x26d   : > { %2218 = vst [vmem:[%s4665_s21 + $0x90] sm:$0xff] %v2154_v4  ;;  %v1249_v19 = vmul.f32 %v5386_v31, %v5385_v41 }
 0x26e   : > { %2219 = vst [vmem:[%s4665_s21 + $0x98] sm:$0xff] %v2155_v36  ;;  %v5387_v36 = vld [vmem:[#allocation119_spill] sm:$0xff] }
 0x270   : > { %v1617_v46 = vpop.permute.xlu0 %1616 }
 0x271   : > { %vm1683_vm12 = vcmp.eq.s32.totalorder %v1617_v46, 1  ;;  %v2737_v54 = vpop.permute.xlu2 %2736  ;;  %v2687_v12 = vpop.permute.xlu1 %2686 }
 0x272   : > { %v4728_v52 = vsel %vm1683_vm12, %v1363_v45, 0.0  ;;  %v2739_v20 = vunpack.i.h.bf16 %v2737_v54  ;;  %v2738_v47 = vunpack.i.l.bf16 %v2737_v54  ;;  %v2689_v3 = vunpack.i.h.bf16 %v2687_v12  ;;  %v5388_v45 = vld [vmem:[#allocation122_spill] sm:$0xff] }
 0x273   : > { %v2688_v24 = vunpack.i.l.bf16 %v2687_v12  ;;  %v5389_v54 = vld [vmem:[#allocation10_spill] sm:$0xff]  ;;  %v5390_v12 = vld [vmem:[#allocation49_spill] sm:$0xff] }
 0x274   : > { %v2161_v29 = vsel %vm1815_vm14, %v2739_v20, %v5379_v50  ;;  %v2160_v30 = vsel %vm1815_vm14, %v2738_v47, %v5380_v16  ;;  %v2141_v18 = vsel %vm1815_vm14, %v2689_v3, %v5381_v62  ;;  %v1250_v20 = vmul.f32 %v5390_v12, %v5389_v54  ;;  %v5391_v3 = vld [vmem:[#allocation61_spill] sm:$0xff] }
 0x275   : > { %2224 = vst [vmem:[%s4665_s21 + $0xc0] sm:$0xff] %v2160_v30  ;;  %v2140_v28 = vsel %vm1815_vm14, %v2688_v24, %v5382_v11  ;;  %vm1638_vm3 = vcmp.eq.s32.totalorder %v5391_v3, 1  ;;  %v5392_v11 = vld [vmem:[#allocation41_spill] sm:$0xff]  ;;  %v5399_v3 = vld [vmem:[#allocation8_spill] sm:$0xff] }
 0x276   : > { %2225 = vst [vmem:[%s4665_s21 + $0xc8] sm:$0xff] %v2161_v29  ;;  %vm1637_vm13 = vcmp.eq.s32.totalorder %v5392_v11, 1  ;;  %v5397_v54 = vld [vmem:[#allocation81_spill] sm:$0xff] }
 0x277   : > { %2204 = vst [vmem:[%s4665_s21 + $0x20] sm:$0xff] %v2140_v28  ;;  %v1318_v28 = vadd.f32 %v4554_v17, %v1250_v20  ;;  %v5398_v20 = vld [vmem:[#allocation85_spill] sm:$0xff] }
 0x278   : > { %2205 = vst [vmem:[%s4665_s21 + $0x28] sm:$0xff] %v2141_v18  ;;  %v2682_v34 = vpop.permute.xlu0 %2681 }
 0x279   : > { %v2684_v6 = vunpack.i.h.bf16 %v2682_v34  ;;  %v2683_v22 = vunpack.i.l.bf16 %v2682_v34  ;;  %v2752_v14 = vpop.permute.xlu2 %2751  ;;  %v2702_v33 = vpop.permute.xlu1 %2701  ;;  %v5393_v34 = vld [vmem:[#allocation118_spill] sm:$0xff] }
 0x27a   : > { %v2754_v55 = vunpack.i.h.bf16 %v2752_v14  ;;  %v2753_v58 = vunpack.i.l.bf16 %v2752_v14  ;;  %v2704_v37 = vunpack.i.h.bf16 %v2702_v33  ;;  %v2703_v7 = vunpack.i.l.bf16 %v2702_v33 }
 0x27b   : > { %v2139_v13 = vsel %vm1815_vm14, %v2684_v6, %v5383_v1  ;;  %v2138_v8 = vsel %vm1815_vm14, %v2683_v22, %v5384_v57  ;;  %v5394_v22 = vld [vmem:[#allocation115_spill] sm:$0xff]  ;;  %v1702_v1 = vsel %vm1638_vm3, %v1318_v28, 0.0 }
 0x27c   : > { %2202 = vst [vmem:[%s4665_s21 + $0x10] sm:$0xff] %v2138_v8  ;;  %v2166_v49 = vsel %vm1815_vm14, %v2753_v58, %v4513_v61  ;;  %v2167_v2 = vsel %vm1815_vm14, %v2754_v55, %v4515_v44  ;;  %v2146_v4 = vsel %vm1815_vm14, %v2703_v7, %v5387_v36  ;;  %v2147_v46 = vsel %vm1815_vm14, %v2704_v37, %v5388_v45  ;;  %v5395_v55 = vld [vmem:[#allocation111_spill] sm:$0xff]  ;;  %v5396_v37 = vld [vmem:[#allocation108_spill] sm:$0xff] }
 0x27d   : > { %2203 = vst [vmem:[%s4665_s21 + $0x18] sm:$0xff] %v2139_v13  ;;  %v1317_v61 = vadd.f32 %v4554_v17, %v1249_v19 }
 0x27e   : > { %2230 = vst [vmem:[%s4665_s21 + $0xf0] sm:$0xff] %v2166_v49 }
 0x27f   : > { %2231 = vst [vmem:[%s4665_s21 + $0xf8] sm:$0xff] %v2167_v2  ;;  %v1701_v33 = vsel %vm1637_vm13, %v1317_v61, 0.0 }
 0x280   : > { %2210 = vst [vmem:[%s4665_s21 + $0x50] sm:$0xff] %v2146_v4  ;;  %v2697_v47 = vpop.permute.xlu0 %2696 }
 0x281   : > { %2211 = vst [vmem:[%s4665_s21 + $0x58] sm:$0xff] %v2147_v46  ;;  %v2699_v44 = vunpack.i.h.bf16 %v2697_v47  ;;  %v2698_v24 = vunpack.i.l.bf16 %v2697_v47  ;;  %v2767_v50 = vpop.permute.xlu2 %2766  ;;  %v2717_v29 = vpop.permute.xlu1 %2716 }
 0x282   : > { %v2769_v16 = vunpack.i.h.bf16 %v2767_v50  ;;  %v2768_v30 = vunpack.i.l.bf16 %v2767_v50  ;;  %v2719_v62 = vunpack.i.h.bf16 %v2717_v29  ;;  %v2718_v18 = vunpack.i.l.bf16 %v2717_v29  ;;  %v5401_v50 = vld [vmem:[#allocation113_spill] sm:$0xff]  ;;  %v5402_v29 = vld [vmem:[#allocation114_spill] sm:$0xff] }
 0x283   : > { %v2145_v6 = vsel %vm1815_vm14, %v2699_v44, %v5393_v34  ;;  %v2144_v14 = vsel %vm1815_vm14, %v2698_v24, %v5394_v22  ;;  %v5400_v44 = vld [vmem:[#allocation66_spill] sm:$0xff] }
 0x284   : > { %2208 = vst [vmem:[%s4665_s21 + $0x40] sm:$0xff] %v2144_v14  ;;  %v2173_v58 = vsel %vm1815_vm14, %v2769_v16, %v5395_v55  ;;  %v2172_v7 = vsel %vm1815_vm14, %v2768_v30, %v5396_v37  ;;  %v2152_v13 = vsel %vm1815_vm14, %v2718_v18, %v1701_v33  ;;  %v2153_v57 = vsel %vm1815_vm14, %v2719_v62, %v1702_v1  ;;  %v5403_v33 = vld [vmem:[#allocation110_spill] sm:$0xff] }
 0x285   : > { %2209 = vst [vmem:[%s4665_s21 + $0x48] sm:$0xff] %v2145_v6  ;;  %v1281_v24 = vmul.f32 %v5400_v44, %v5399_v3  ;;  %v5411_v44 = vld [vmem:[#allocation58_spill] sm:$0xff] }
 0x286   : > { %2236 = vst [vmem:[%s4665_s21 + $0x120] sm:$0xff] %v2172_v7 }
 0x287   : > { %2237 = vst [vmem:[%s4665_s21 + $0x128] sm:$0xff] %v2173_v58  ;;  %v5404_v58 = vld [vmem:[#allocation95_spill] sm:$0xff] }
 0x288   : > { %2216 = vst [vmem:[%s4665_s21 + $0x80] sm:$0xff] %v2152_v13  ;;  %v2712_v8 = vpop.permute.xlu0 %2711  ;;  %v5405_v13 = vld [vmem:[#allocation84_spill] sm:$0xff] }
 0x289   : > { %2217 = vst [vmem:[%s4665_s21 + $0x88] sm:$0xff] %v2153_v57  ;;  %v2714_v41 = vunpack.i.h.bf16 %v2712_v8  ;;  %v2713_v31 = vunpack.i.l.bf16 %v2712_v8  ;;  %v2782_v19 = vpop.permute.xlu2 %2781  ;;  %v2732_v49 = vpop.permute.xlu1 %2731  ;;  %v5406_v8 = vld [vmem:[#allocation13_spill] sm:$0xff] }
 0x28a   : > { %v2784_v2 = vunpack.i.h.bf16 %v2782_v19  ;;  %v2783_v36 = vunpack.i.l.bf16 %v2782_v19  ;;  %v2734_v4 = vunpack.i.h.bf16 %v2732_v49  ;;  %v2733_v45 = vunpack.i.l.bf16 %v2732_v49  ;;  %v5407_v19 = vld [vmem:[#allocation15_spill] sm:$0xff]  ;;  %v5408_v49 = vld [vmem:[#allocation80_spill] sm:$0xff] }
 0x28b   : > { %v2151_v46 = vsel %vm1815_vm14, %v2714_v41, %v4538_v60  ;;  %v2150_v12 = vsel %vm1815_vm14, %v2713_v31, %v5397_v54 }
 0x28c   : > { %2214 = vst [vmem:[%s4665_s21 + $0x70] sm:$0xff] %v2150_v12  ;;  %v2179_v61 = vsel %vm1815_vm14, %v2784_v2, %v5398_v20  ;;  %v2178_v47 = vsel %vm1815_vm14, %v2783_v36, %v4560_v0  ;;  %v2158_v60 = vsel %vm1815_vm14, %v2733_v45, %v5401_v50  ;;  %v2159_v16 = vsel %vm1815_vm14, %v2734_v4, %v5402_v29  ;;  %v5412_v50 = vld [vmem:[#allocation121_spill] sm:$0xff] }
 0x28d   : > { %2215 = vst [vmem:[%s4665_s21 + $0x78] sm:$0xff] %v2151_v46  ;;  %v1349_v0 = vadd.f32 %v4554_v17, %v1281_v24 }
 0x28e   : > { %2242 = vst [vmem:[%s4665_s21 + $0x150] sm:$0xff] %v2178_v47  ;;  %v5410_v47 = vld [vmem:[#allocation47_spill] sm:$0xff] }
 0x28f   : > { %2243 = vst [vmem:[%s4665_s21 + $0x158] sm:$0xff] %v2179_v61  ;;  %v1733_v51 = vsel %vm1669_vm7, %v1349_v0, 0.0  ;;  %v5409_v61 = vld [vmem:[#allocation7_spill] sm:$0xff]  ;;  %v5413_v0 = vld [vmem:[#allocation82_spill] sm:$0xff] }
 0x290   : > { %2222 = vst [vmem:[%s4665_s21 + $0xb0] sm:$0xff] %v2158_v60  ;;  %v2727_v30 = vpop.permute.xlu0 %2726  ;;  %v1265_v3 = vmul.f32 %v5410_v47, %v5409_v61 }
 0x291   : > { %2223 = vst [vmem:[%s4665_s21 + $0xb8] sm:$0xff] %v2159_v16  ;;  %v2729_v62 = vunpack.i.h.bf16 %v2727_v30  ;;  %v2728_v18 = vunpack.i.l.bf16 %v2727_v30  ;;  %v2797_v11 = vpop.permute.xlu2 %2796  ;;  %v2747_v28 = vpop.permute.xlu1 %2746 }
 0x292   : > { %v2799_v34 = vunpack.i.h.bf16 %v2797_v11  ;;  %v2798_v6 = vunpack.i.l.bf16 %v2797_v11  ;;  %v2749_v22 = vunpack.i.h.bf16 %v2747_v28  ;;  %v2748_v14 = vunpack.i.l.bf16 %v2747_v28  ;;  %v5415_v11 = vld [vmem:[#allocation89_spill] sm:$0xff] }
 0x293   : > { %v2157_v55 = vsel %vm1815_vm14, %v2729_v62, %v5403_v33  ;;  %v2156_v37 = vsel %vm1815_vm14, %v2728_v18, %v5404_v58  ;;  %v5414_v18 = vld [vmem:[#allocation51_spill] sm:$0xff] }
 0x294   : > { %2220 = vst [vmem:[%s4665_s21 + $0xa0] sm:$0xff] %v2156_v37  ;;  %v2185_v7 = vsel %vm1815_vm14, %v2799_v34, %v4530_v39  ;;  %v2184_v1 = vsel %vm1815_vm14, %v2798_v6, %v1733_v51  ;;  %v2164_v57 = vsel %vm1815_vm14, %v2748_v14, %v5405_v13  ;;  %v2165_v41 = vsel %vm1815_vm14, %v2749_v22, %v5406_v8  ;;  %v5416_v34 = vld [vmem:[#allocation57_spill] sm:$0xff] }
 0x295   : > { %2221 = vst [vmem:[%s4665_s21 + $0xa8] sm:$0xff] %v2157_v55  ;;  %v1266_v39 = vmul.f32 %v5408_v49, %v5407_v19  ;;  %vm1653_vm8 = vcmp.eq.s32.totalorder %v5414_v18, 1  ;;  %vm1654_vm15 = vcmp.eq.s32.totalorder %v5416_v34, 1 }
 0x296   : > { %2248 = vst [vmem:[%s4665_s21 + $0x180] sm:$0xff] %v2184_v1 }
 0x297   : > { %2249 = vst [vmem:[%s4665_s21 + $0x188] sm:$0xff] %v2185_v7  ;;  %v1334_v30 = vadd.f32 %v4554_v17, %v1266_v39 }
 0x298   : > { %2228 = vst [vmem:[%s4665_s21 + $0xe0] sm:$0xff] %v2164_v57  ;;  %v2742_v31 = vpop.permute.xlu0 %2741 }
 0x299   : > { %2229 = vst [vmem:[%s4665_s21 + $0xe8] sm:$0xff] %v2165_v41  ;;  %v2744_v2 = vunpack.i.h.bf16 %v2742_v31  ;;  %v2743_v36 = vunpack.i.l.bf16 %v2742_v31  ;;  %v2812_v4 = vpop.permute.xlu2 %2811  ;;  %v2762_v45 = vpop.permute.xlu1 %2761  ;;  %v1718_v22 = vsel %vm1654_vm15, %v1334_v30, 0.0  ;;  %v5417_v41 = vld [vmem:[#allocation11_spill] sm:$0xff] }
 0x29a   : > { %v2814_v46 = vunpack.i.h.bf16 %v2812_v4  ;;  %v2813_v54 = vunpack.i.l.bf16 %v2812_v4  ;;  %v2764_v12 = vunpack.i.h.bf16 %v2762_v45  ;;  %v2763_v20 = vunpack.i.l.bf16 %v2762_v45  ;;  %v5418_v45 = vld [vmem:[#allocation112_spill] sm:$0xff] }
 0x29b   : > { %v2163_v24 = vsel %vm1815_vm14, %v2744_v2, %v5411_v44  ;;  %v2162_v60 = vsel %vm1815_vm14, %v2743_v36, %v5412_v50 }
 0x29c   : > { %2226 = vst [vmem:[%s4665_s21 + $0xd0] sm:$0xff] %v2162_v60  ;;  %v2191_v29 = vsel %vm1815_vm14, %v2814_v46, %v4581_v9  ;;  %v2190_v16 = vsel %vm1815_vm14, %v2813_v54, %v4655_v27  ;;  %v2170_v62 = vsel %vm1815_vm14, %v2763_v20, %v5413_v0  ;;  %v2171_v28 = vsel %vm1815_vm14, %v2764_v12, %v5415_v11 }
 0x29d   : > { %2227 = vst [vmem:[%s4665_s21 + $0xd8] sm:$0xff] %v2163_v24  ;;  %v1333_v9 = vadd.f32 %v4554_v17, %v1265_v3 }
 0x29e   : > { %2254 = vst [vmem:[%s4665_s21 + $0x1b0] sm:$0xff] %v2190_v16 }
 0x29f   : > { %2255 = vst [vmem:[%s4665_s21 + $0x1b8] sm:$0xff] %v2191_v29  ;;  %v1717_v6 = vsel %vm1653_vm8, %v1333_v9, 0.0 }
 0x2a0   : > { %2234 = vst [vmem:[%s4665_s21 + $0x110] sm:$0xff] %v2170_v62  ;;  %v2757_v27 = vpop.permute.xlu0 %2756 }
 0x2a1   : > { %2235 = vst [vmem:[%s4665_s21 + $0x118] sm:$0xff] %v2171_v28  ;;  %v2759_v14 = vunpack.i.h.bf16 %v2757_v27  ;;  %v2758_v51 = vunpack.i.l.bf16 %v2757_v27  ;;  %v2827_v33 = vpop.permute.xlu2 %2826  ;;  %v2777_v55 = vpop.permute.xlu1 %2776 }
 0x2a2   : > { %v2829_v58 = vunpack.i.h.bf16 %v2827_v33  ;;  %v2828_v17 = vunpack.i.l.bf16 %v2827_v33  ;;  %v2779_v37 = vunpack.i.h.bf16 %v2777_v55  ;;  %v2778_v7 = vunpack.i.l.bf16 %v2777_v55 }
 0x2a3   : > { %v2169_v1 = vsel %vm1815_vm14, %v2759_v14, %v1718_v22  ;;  %v2168_v13 = vsel %vm1815_vm14, %v2758_v51, %v1717_v6 }
 0x2a4   : > { %2232 = vst [vmem:[%s4665_s21 + $0x100] sm:$0xff] %v2168_v13  ;;  %v2197_v57 = vsel %vm1815_vm14, %v2829_v58, %v4630_v40  ;;  %v2196_v8 = vsel %vm1815_vm14, %v2828_v17, %v4696_v32  ;;  %v2176_v31 = vsel %vm1815_vm14, %v2778_v7, %v5417_v41  ;;  %v2177_v19 = vsel %vm1815_vm14, %v2779_v37, %v4579_v5 }
 0x2a5   : > { %2233 = vst [vmem:[%s4665_s21 + $0x108] sm:$0xff] %v2169_v1 }
 0x2a6   : > { %2260 = vst [vmem:[%s4665_s21 + $0x1e0] sm:$0xff] %v2196_v8 }
 0x2a7   : > { %2261 = vst [vmem:[%s4665_s21 + $0x1e8] sm:$0xff] %v2197_v57 }
 0x2a8   : > { %2240 = vst [vmem:[%s4665_s21 + $0x140] sm:$0xff] %v2176_v31  ;;  %v2772_v40 = vpop.permute.xlu0 %2771 }
 0x2a9   : > { %2241 = vst [vmem:[%s4665_s21 + $0x148] sm:$0xff] %v2177_v19  ;;  %v2774_v49 = vunpack.i.h.bf16 %v2772_v40  ;;  %v2773_v32 = vunpack.i.l.bf16 %v2772_v40  ;;  %v2792_v39 = vpop.permute.xlu1 %2791 }
 0x2aa   : > { %v2794_v2 = vunpack.i.h.bf16 %v2792_v39  ;;  %v2793_v36 = vunpack.i.l.bf16 %v2792_v39 }
 0x2ab   : > { %v2175_v4 = vsel %vm1815_vm14, %v2774_v49, %v4532_v53  ;;  %v2174_v5 = vsel %vm1815_vm14, %v2773_v32, %v5418_v45 }
 0x2ac   : > { %2238 = vst [vmem:[%s4665_s21 + $0x130] sm:$0xff] %v2174_v5  ;;  %v2182_v46 = vsel %vm1815_vm14, %v2793_v36, %v4505_v21  ;;  %v2183_v54 = vsel %vm1815_vm14, %v2794_v2, %v4624_v56 }
 0x2ad   : > { %2239 = vst [vmem:[%s4665_s21 + $0x138] sm:$0xff] %v2175_v4 }
 0x2ae   : > { %2246 = vst [vmem:[%s4665_s21 + $0x170] sm:$0xff] %v2182_v46 }
 0x2af   : > { %2247 = vst [vmem:[%s4665_s21 + $0x178] sm:$0xff] %v2183_v54 }
 0x2b0   : > { %v2787_v53 = vpop.permute.xlu0 %2786 }
 0x2b1   : > { %v2789_v12 = vunpack.i.h.bf16 %v2787_v53  ;;  %v2788_v20 = vunpack.i.l.bf16 %v2787_v53  ;;  %v2807_v61 = vpop.permute.xlu1 %2806 }
 0x2b2   : > { %v2809_v47 = vunpack.i.h.bf16 %v2807_v61  ;;  %v2808_v3 = vunpack.i.l.bf16 %v2807_v61 }
 0x2b3   : > { %v2181_v21 = vsel %vm1815_vm14, %v2789_v12, %v4583_v48  ;;  %v2180_v56 = vsel %vm1815_vm14, %v2788_v20, %v4602_v59 }
 0x2b4   : > { %2244 = vst [vmem:[%s4665_s21 + $0x160] sm:$0xff] %v2180_v56  ;;  %v2188_v44 = vsel %vm1815_vm14, %v2808_v3, %v4558_v35  ;;  %v2189_v24 = vsel %vm1815_vm14, %v2809_v47, %v4674_v42 }
 0x2b5   : > { %2245 = vst [vmem:[%s4665_s21 + $0x168] sm:$0xff] %v2181_v21 }
 0x2b6   : > { %2252 = vst [vmem:[%s4665_s21 + $0x1a0] sm:$0xff] %v2188_v44 }
 0x2b7   : > { %2253 = vst [vmem:[%s4665_s21 + $0x1a8] sm:$0xff] %v2189_v24 }
 0x2b8   : > { %v2802_v48 = vpop.permute.xlu0 %2801 }
 0x2b9   : > { %v2804_v50 = vunpack.i.h.bf16 %v2802_v48  ;;  %v2803_v59 = vunpack.i.l.bf16 %v2802_v48  ;;  %v2822_v60 = vpop.permute.xlu1 %2821 }
 0x2ba   : > { %v2824_v29 = vunpack.i.h.bf16 %v2822_v60  ;;  %v2823_v16 = vunpack.i.l.bf16 %v2822_v60 }
 0x2bb   : > { %v2187_v35 = vsel %vm1815_vm14, %v2804_v50, %v4632_v43  ;;  %v2186_v42 = vsel %vm1815_vm14, %v2803_v59, %v4653_v10 }
 0x2bc   : > { %2250 = vst [vmem:[%s4665_s21 + $0x190] sm:$0xff] %v2186_v42  ;;  %v2194_v30 = vsel %vm1815_vm14, %v2823_v16, %v4604_v15  ;;  %v2195_v0 = vsel %vm1815_vm14, %v2824_v29, %v4714_v23 }
 0x2bd   : > { %2251 = vst [vmem:[%s4665_s21 + $0x198] sm:$0xff] %v2187_v35 }
 0x2be   : > { %2258 = vst [vmem:[%s4665_s21 + $0x1d0] sm:$0xff] %v2194_v30 }
 0x2bf   : > { %2259 = vst [vmem:[%s4665_s21 + $0x1d8] sm:$0xff] %v2195_v0 }
 0x2c0   : > { %v2817_v43 = vpop.permute.xlu0 %2816 }
 0x2c1   : > { %v2819_v62 = vunpack.i.h.bf16 %v2817_v43  ;;  %v2818_v10 = vunpack.i.l.bf16 %v2817_v43 }
 0x2c3   : > { %v2193_v15 = vsel %vm1815_vm14, %v2819_v62, %v4676_v63  ;;  %v2192_v23 = vsel %vm1815_vm14, %v2818_v10, %v4692_v25 }
 0x2c4   : > { %2256 = vst [vmem:[%s4665_s21 + $0x1c0] sm:$0xff] %v2192_v23 }
 0x2c5   : > { %2257 = vst [vmem:[%s4665_s21 + $0x1c8] sm:$0xff] %v2193_v15 }
 0x2c8   : > { %v2832_v18 = vpop.permute.xlu0 %2831 }
 0x2c9   : > { %v2834_v11 = vunpack.i.h.bf16 %v2832_v18  ;;  %v2833_v28 = vunpack.i.l.bf16 %v2832_v18 }
 0x2cb   : > { %v2199_v9 = vsel %vm1815_vm14, %v2834_v11, %v4716_v26  ;;  %v2198_v63 = vsel %vm1815_vm14, %v2833_v28, %v4728_v52 }
 0x2cc   : > { %2262 = vst [vmem:[%s4665_s21 + $0x1f0] sm:$0xff] %v2198_v63 }
 0x2cd   : > { %2263 = vst [vmem:[%s4665_s21 + $0x1f8] sm:$0xff] %v2199_v9 }
 0x2ce   : > { %2992 = shalt.err (!%p2989_p7)
}
 0x2cf   : > { %s3065_s11 = smov 128   ;;  %s3066_s21 = smov 8  }
 0x2d0   : > { %2595 = dma.vmem_to_hbm [thread:$0]  (%p3138_p3), %s2280_s4, 8192, %s2282_s8, %s2265_s5, %s3065_s11, %s3065_s11, %s3066_s21  }
 0x2d1 PF: > { %p2601_p9 = scmp.ge.s32.totalorder %s3059_s19, 2  ;;  %s2296_s15 = sand.u32 1, %s3031_s12  }
 0x2d2   : > { %s2297_s27 = scalar_lea.sflag [#allocation3], %s2296_s15 }
 0x2d3   : > { %p2598_p10 = pnand %p2601_p9, %p3147_p8 }
 0x2d5   : > { %p2599_p11 = pneg %p2598_p10 }
 0x2d7   : > { %3026 = dma.done.wait (%p2599_p11), %s2297_s27, 8192  }
 0x2d8   : > { %3028 = vsyncadd (%p2599_p11), %s2297_s27, 4294959104  ;;  %s16_s19 = sadd.s32 1, %s3059_s19   ;;  %s5419_s12 = smov %s3035_s13 }
 0x2d9   : > { %p13_p12 = scmp.ge.s32.totalorder %s16_s19, 6   ;;  %s5420_s13 = smov %s3039_s14 }
 0x2da   : > { %s5421_s14 = smov %s3156_s30  ;;  %s5422_s15 = smov %s3051_s17 }
 0x2db   : > { %s5423_s16 = smov %s3055_s18  ;;  %s5424_s17 = smov %s5427_s22 }
 0x2dc   : > { %s5425_s18 = smov %s5431_s23  ;;  %15 = sbr.rel (!%p13_p12) target bundleno = 5 (0x5), region = 67 }
 0x2e1   :  { %2303 = vsyncpa [#allocation3], 1 }
 0x2e2   :  { %2305 = vsyncpa [#allocation3 + $0x1], 1 }

</bundles_post_ra>
